<compile_context>
chip_gen: v7x
topology: tpu7x:2x2x1
jax: 0.10.0
libtpu: 0.0.40
codegen_flags: <defaults>
</compile_context>

<pallas_src>
import math
import functools

import numpy as np
import jax
import jax.numpy as jnp
from jax.experimental import pallas as pl
from jax.experimental.pallas import tpu as pltpu


def _round_up(x, m):
    return ((x + m - 1) // m) * m


# -----------------------------------------------------------------------------
# get_gaussian_kernel(sd=1.5) reference + exact separable 1-D weights
# -----------------------------------------------------------------------------
def get_gaussian_kernel(sd=1.5):
    ksz = int(4 * sd + 1)                      # 7
    assert ksz % 2 == 1
    k = ksz // 2
    K = np.zeros((ksz, ksz), dtype=np.float64)
    for i in range(ksz):
        for j in range(ksz):
            K[i, j] = math.exp(-((i - k) ** 2 + (j - k) ** 2) / (2.0 * sd ** 2))
    K = K / K.sum()
    return K.astype(np.float32), ksz


def separable_gaussian_weights(sd=1.5):
    """1-D weights v such that outer(v, v) == get_gaussian_kernel(sd) exactly."""
    ksz = int(4 * sd + 1)
    assert ksz % 2 == 1
    k = ksz // 2
    g = np.array([math.exp(-((i - k) ** 2) / (2.0 * sd ** 2)) for i in range(ksz)],
                 dtype=np.float64)
    v = g / g.sum()
    return tuple(float(x) for x in v), ksz


# -----------------------------------------------------------------------------
# Pallas kernel 1: separable Gaussian blur on a flattened (lane-dense) layout.
# Symmetric taps are paired: tmp += w[i]*(shift_i + shift_{ksz-1-i}).
# -----------------------------------------------------------------------------
def _blur_sep_kernel(x_ref, o_ref, *, w1d, wp, l_tmp, l_out, ksz):
    x = x_ref[...]                                       # (NC, L_in) f32
    half = ksz // 2
    # vertical pass: tmp[p] = sum_i w[i] * x[p + i*Wp]
    tmp = w1d[half] * x[:, half * wp:half * wp + l_tmp]
    for i in range(half):
        j = ksz - 1 - i
        tmp = tmp + w1d[i] * (x[:, i * wp:i * wp + l_tmp] +
                              x[:, j * wp:j * wp + l_tmp])
    # horizontal pass: out[p] = sum_j w[j] * tmp[p + j]
    out = w1d[half] * tmp[:, half:half + l_out]
    for i in range(half):
        j = ksz - 1 - i
        out = out + w1d[i] * (tmp[:, i:i + l_out] + tmp[:, j:j + l_out])
    o_ref[...] = out


@functools.lru_cache(maxsize=None)
def _blur_gather_indices(h, w, pad, l_in):
    """Flat gather indices implementing reflect padding + flatten + extension."""
    hp, wp = h + 2 * pad, w + 2 * pad

    def refl(i, n):
        if i < 0:
            return -i
        if i >= n:
            return 2 * (n - 1) - i
        return i

    idx = np.zeros((l_in,), dtype=np.int32)
    for q in range(hp * wp):
        rp, cp = divmod(q, wp)
        idx[q] = refl(rp - pad, h) * w + refl(cp - pad, w)
    # Entries q >= hp*wp never influence the cropped output: the largest index the
    # kernel reads for a kept pixel is exactly hp*wp - 1.  Leave them at 0.
    return idx


def gaussian_blur(x, w1d, ksz):
    """Depthwise Gaussian blur with reflect padding. x: (N, C, H, W) f32."""
    N, C, H, W = x.shape
    pad = ksz // 2
    assert pad <= H - 1 and pad <= W - 1
    Hp, Wp = H + 2 * pad, W + 2 * pad
    NC = N * C

    L_out = _round_up(H * Wp, 128)                       # lane-dense unmasked store
    L_tmp = L_out + (ksz - 1)
    L_in = _round_up(L_tmp + (ksz - 1) * Wp, 128)
    # Shifted-slice safety (no runtime OOB check on VMEM values):
    assert L_tmp + (ksz - 1) * Wp <= L_in
    assert L_in >= Hp * Wp

    # One gather = reflect pad + flatten + zero-extension (single XLA op).
    idx = jnp.asarray(_blur_gather_indices(H, W, pad, L_in))
    xf = jnp.take(x.reshape(NC, H * W), idx, axis=1)     # (NC, L_in)

    # Whole problem is a few tens of KiB -> single invocation, no grid.
    # TODO(synk): tile over NC (multiples of 8, "parallel" axis) once N*C is large
    # enough that a single block no longer fits comfortably in VMEM.
    flops = 2 * ksz * NC * (L_tmp + L_out)
    bytes_accessed = 4 * NC * (L_in + L_out)
    out = pl.pallas_call(
        functools.partial(_blur_sep_kernel, w1d=w1d, wp=Wp,
                          l_tmp=L_tmp, l_out=L_out, ksz=ksz),
        out_shape=jax.ShapeDtypeStruct((NC, L_out), jnp.float32),
        in_specs=[pl.BlockSpec(memory_space=pltpu.MemorySpace.VMEM)],
        out_specs=pl.BlockSpec(memory_space=pltpu.MemorySpace.VMEM),
        cost_estimate=pl.CostEstimate(flops=flops, transcendentals=0,
                                      bytes_accessed=bytes_accessed),
    )(xf)

    out = out[:, :H * Wp].reshape(NC, H, Wp)[:, :, :W]
    return out.reshape(N, C, H, W)


# -----------------------------------------------------------------------------
# Pallas kernel 2: per-batch 3x3 color transform + masked L1, sublane-dense,
# gridded accumulator (grid = (B, HW-tiles); output block is the accumulator).
#   num[b] += sum_ch (|(C_b^T pred_b)[ch] - gt_b[ch]| + eps) * valid_b
# The denominator sum(valid) and the final division happen in the XLA wrapper.
# -----------------------------------------------------------------------------
def _aligned_l1_kernel(cmat_ref, pred_ref, gt_ref, valid_ref, num_ref, *, eps):
    b = pl.program_id(0)
    r = pl.program_id(1)

    @pl.when(r == 0)
    def _():
        num_ref[...] = jnp.zeros_like(num_ref)

    c = [cmat_ref[b, k] for k in range(9)]               # 9 SMEM scalars, hoisted
    p0 = pred_ref[0]                                      # (tile_r, 128)
    p1 = pred_ref[1]
    p2 = pred_ref[2]
    contrib = None
    for ch in range(3):                                   # color-matched channel ch
        t = c[ch] * p0 + c[3 + ch] * p1 + c[6 + ch] * p2
        l1 = jnp.abs(t - gt_ref[ch]) + eps
        contrib = l1 if contrib is None else contrib + l1
    num_ref[...] += contrib * valid_ref[...]              # masked accumulate (VPU only)


def aligned_l1_reduce(c_mat, pred_warped, gt, valid, elem_ratio, eps=1e-12):
    B, C, H, W = pred_warped.shape
    assert C == 3
    HW = H * W
    R = -(-HW // 128)                                     # rows of 128 lanes
    tile_r = min(64, _round_up(R, 8))                     # sublane-dense tile
    Rp = _round_up(R, tile_r)
    HWp = Rp * 128
    n_r = Rp // tile_r

    pad_cfg = ((0, 0), (0, 0), (0, HWp - HW))
    pred4 = jnp.pad(pred_warped.reshape(B, 3, HW), pad_cfg).reshape(B, 3, Rp, 128)
    gt4 = jnp.pad(gt.reshape(B, 3, HW), pad_cfg).reshape(B, 3, Rp, 128)
    valid4 = jnp.pad(valid.reshape(B, HW),
                     ((0, 0), (0, HWp - HW))).reshape(B, Rp, 128)  # zeros in padding
    cmat2 = c_mat.reshape(B, 9)

    flops = 14 * 3 * B * HWp
    bytes_accessed = 4 * (2 * B * 3 * HWp + B * HWp + B * tile_r * 128)
    num = pl.pallas_call(
        functools.partial(_aligned_l1_kernel, eps=eps),
        out_shape=jax.ShapeDtypeStruct((B, tile_r, 128), jnp.float32),
        grid_spec=pltpu.PrefetchScalarGridSpec(
            num_scalar_prefetch=1,                         # c_mat -> SMEM
            grid=(B, n_r),
            in_specs=[
                pl.BlockSpec((None, 3, tile_r, 128), lambda b, r, cm: (b, 0, r, 0)),
                pl.BlockSpec((None, 3, tile_r, 128), lambda b, r, cm: (b, 0, r, 0)),
                pl.BlockSpec((None, tile_r, 128), lambda b, r, cm: (b, r, 0)),
            ],
            out_specs=pl.BlockSpec((None, tile_r, 128), lambda b, r, cm: (b, 0, 0)),
        ),
        compiler_params=pltpu.CompilerParams(
            dimension_semantics=("parallel", "arbitrary"),
            vmem_limit_bytes=32 * 1024 * 1024),
        cost_estimate=pl.CostEstimate(flops=flops, transcendentals=0,
                                      bytes_accessed=bytes_accessed),
    )(cmat2, pred4, gt4, valid4)

    den = jnp.sum(valid)                                   # denominator in XLA (per review)
    return jnp.sum(num) / (den * elem_ratio + eps)


# -----------------------------------------------------------------------------
# JAX glue reproducing warp / F.interpolate / match_colors semantics
# -----------------------------------------------------------------------------
def warp(feat, flow):
    """Bilinear warp with zero padding (grid_sample stand-in): sample at x+flow."""
    B, C, H, W = feat.shape
    ys, xs = jnp.meshgrid(jnp.arange(H, dtype=jnp.float32),
                          jnp.arange(W, dtype=jnp.float32), indexing='ij')
    x_src = xs[None] + flow[:, 0]
    y_src = ys[None] + flow[:, 1]
    x0 = jnp.floor(x_src)
    y0 = jnp.floor(y_src)
    wx = x_src - x0
    wy = y_src - y0

    def sample(feat_b, yi, xi):
        inb = ((yi >= 0) & (yi < H) & (xi >= 0) & (xi < W)).astype(feat_b.dtype)
        yc = jnp.clip(yi, 0, H - 1)
        xc = jnp.clip(xi, 0, W - 1)
        return feat_b[:, yc, xc] * inb[None]

    def one(feat_b, x0b, y0b, wxb, wyb):
        x0i = x0b.astype(jnp.int32)
        y0i = y0b.astype(jnp.int32)
        v00 = sample(feat_b, y0i, x0i)
        v01 = sample(feat_b, y0i, x0i + 1)
        v10 = sample(feat_b, y0i + 1, x0i)
        v11 = sample(feat_b, y0i + 1, x0i + 1)
        return (v00 * (1 - wxb) * (1 - wyb) + v01 * wxb * (1 - wyb)
                + v10 * (1 - wxb) * wyb + v11 * wxb * wyb)

    return jax.vmap(one)(feat, x0, y0, wx, wy)


def bilinear_downsample(x, factor):
    """F.interpolate(scale_factor=1/f, bilinear, align_corners=False) for even f | H,W."""
    B, C, H, W = x.shape
    f = int(factor)
    assert f % 2 == 0 and H % f == 0 and W % f == 0
    Ho, Wo = H // f, W // f
    lo = f // 2 - 1
    xr = x.reshape(B, C, Ho, f, Wo, f)
    return xr[:, :, :, lo:lo + 2, :, lo:lo + 2].mean(axis=(3, 5))


def bilinear_upsample(x, scale_factor, out_size):
    """F.interpolate(scale_factor=s, bilinear, align_corners=False)."""
    B, C, h, w = x.shape

    def coords(out_n, in_n):
        src = (jnp.arange(out_n, dtype=jnp.float32) + 0.5) / scale_factor - 0.5
        src = jnp.maximum(src, 0.0)
        i0 = jnp.minimum(jnp.floor(src).astype(jnp.int32), in_n - 1)
        i1 = jnp.minimum(i0 + 1, in_n - 1)
        frac = src - i0.astype(jnp.float32)
        return i0, i1, frac

    y0, y1, fy = coords(out_size, h)
    x0, x1, fx = coords(out_size, w)
    fy = fy[None, None, :, None]
    g = x[:, :, y0, :] * (1 - fy) + x[:, :, y1, :] * fy
    fx = fx[None, None, None, :]
    return g[:, :, :, x0] * (1 - fx) + g[:, :, :, x1] * fx


def _solve_3x3(A, B):
    """Solve A X = B for 3x3 A via the adjugate (avoids linalg custom calls)."""
    a, b, c = A[0, 0], A[0, 1], A[0, 2]
    d, e, f = A[1, 0], A[1, 1], A[1, 2]
    g, h, i = A[2, 0], A[2, 1], A[2, 2]
    det = a * (e * i - f * h) - b * (d * i - f * g) + c * (d * h - e * g)
    adj = jnp.array([[e * i - f * h, c * h - b * i, b * f - c * e],
                     [f * g - d * i, a * i - c * g, c * d - a * f],
                     [d * h - e * g, b * g - a * h, a * e - b * d]])
    return (adj @ B) / det


def match_colors(im_ref, im_q, im_test, ksz, gauss_w1d):
    """Returns (c_mat, valid). Applying c_mat to im_test and the masked L1 are
    fused into the Pallas kernel `aligned_l1_reduce`."""
    bi = 5
    B = im_ref.shape[0]
    blurred = gaussian_blur(jnp.concatenate([im_ref, im_q], axis=0), gauss_w1d, ksz)
    im_ref_mean = blurred[:B, :, bi:-bi, bi:-bi]
    im_q_mean = blurred[B:, :, bi:-bi, bi:-bi]
    _, C, hh, ww = im_ref_mean.shape
    ir = im_ref_mean.reshape(B, C, hh * ww)
    iq = im_q_mean.reshape(B, C, hh * ww)

    # per-batch least-squares 3x3 color transform (normal equations)
    def solve_one(ir_b, iq_b):
        AtA = iq_b @ iq_b.T
        Atb = iq_b @ ir_b.T
        return _solve_3x3(AtA, Atb)                       # (3, 3)

    c_mat = jax.vmap(solve_one)(ir, iq)                   # (B, 3, 3)

    iq_conv = jnp.einsum('bkp,bkc->bcp', iq, c_mat)
    err = jnp.sqrt(jnp.sum(((iq_conv - ir) * 255.0) ** 2, axis=1))
    valid_small = (err < 20.0).astype(jnp.float32).reshape(B, 1, hh, ww)

    up_factor = im_test.shape[-1] / ww
    valid = bilinear_upsample(valid_small, up_factor, im_test.shape[-1])
    valid = (valid > 0.9).astype(jnp.float32)             # (B, 1, H, W)
    return c_mat, valid


def alignment_net_stub(pred_n, gt_n):
    # TODO(synk): the real alignment_net is an external optical-flow CNN (PWC-Net);
    # replaced by a deterministic constant-flow stand-in (no checkpoint loading).
    del gt_n
    B, _, H, W = pred_n.shape
    fx = jnp.full((B, 1, H, W), 2.5, jnp.float32)
    fy = jnp.full((B, 1, H, W), -1.75, jnp.float32)
    return jnp.concatenate([fx, fy], axis=1)


def aligned_l1(pred, gt, burst_input, sr_factor=4, boundary_ignore=None):
    gauss_w1d, ksz = separable_gaussian_weights(sd=1.5)

    flow = jax.lax.stop_gradient(
        alignment_net_stub(pred / (pred.max() + 1e-6), gt / (gt.max() + 1e-6)))

    pred_warped = warp(pred, flow)

    ds_factor = 1.0 / float(2.0 * sr_factor)
    flow_ds = bilinear_downsample(flow, int(round(1.0 / ds_factor))) * ds_factor
    burst_0 = burst_input[:, 0, jnp.array([0, 1, 3])]     # (B, 3, h, w)
    burst_0_warped = warp(burst_0, flow_ds)
    frame_gt_ds = bilinear_downsample(gt, int(round(1.0 / ds_factor)))

    c_mat, valid = match_colors(frame_gt_ds, burst_0_warped, pred_warped,
                                ksz, gauss_w1d)

    gt_c = gt
    if boundary_ignore is not None:
        bnd = boundary_ignore
        pred_warped = pred_warped[..., bnd:-bnd, bnd:-bnd]
        gt_c = gt_c[..., bnd:-bnd, bnd:-bnd]
        valid = valid[..., bnd:-bnd, bnd:-bnd]

    elem_ratio = pred_warped.shape[1] / valid.shape[1]    # l1.numel()/valid.numel() == 3
    return aligned_l1_reduce(c_mat, pred_warped, gt_c, valid, elem_ratio)


if __name__ == "__main__":
    key = jax.random.PRNGKey(0)
    B, H, W = 2, 112, 112
    sr = 4
    h, w = H // (2 * sr), W // (2 * sr)                   # 14, 14

    k1, k2, k3 = jax.random.split(key, 3)
    pred = jax.random.uniform(k1, (B, 3, H, W), jnp.float32)
    gt = jax.random.uniform(k2, (B, 3, H, W), jnp.float32)
    burst_input = jax.random.uniform(k3, (B, 4, 4, h, w), jnp.float32)

    # make burst frame 0 a (linearly color-shifted) downsampled gt so that the
    # color-matching valid mask is non-trivial
    gt_ds = bilinear_downsample(gt, 2 * sr)
    burst_input = burst_input.at[:, 0, jnp.array([0, 1, 3])].set(0.9 * gt_ds + 0.05)

    loss_fn = jax.jit(aligned_l1, static_argnames=("sr_factor", "boundary_ignore"))
    loss = loss_fn(pred, gt, burst_input, sr_factor=sr, boundary_ignore=None)
    loss = jax.block_until_ready(loss)
    assert jnp.isfinite(loss)
    print("KERNEL_OK")
</pallas_src>

<mosaic_0001>
module attributes {stable_mosaic.version = 11 : i64} {
  func.func private @main(%arg0: i32) attributes {dimension_semantics = [#tpu.dimension_semantics<core_parallel>], iteration_bounds = array<i64: 2>, tpu.core_type = #tpu.core_type<sc_scalar_subcore>, window_params = []} {
    return
  }
}

module attributes {stable_mosaic.version = 11 : i64} {
  func.func private @main(%arg0: i32) attributes {dimension_semantics = [#tpu.dimension_semantics<core_parallel>], iteration_bounds = array<i64: 2>, tpu.core_type = #tpu.core_type<sc_scalar_subcore>, window_params = []} {
    return
  }
}

module attributes {stable_mosaic.version = 11 : i64} {
  func.func @_blur_sep_kernel(%arg0: memref<12x512xf32, #tpu.memory_space<vmem>>, %arg1: memref<12x384xf32, #tpu.memory_space<vmem>>) attributes {dimension_semantics = [], scalar_prefetch = 0 : i64, scratch_operands = 0 : i64, tpu.core_type = #tpu.core_type<tc>} {
    %c0 = arith.constant 0 : index
    %c0_0 = arith.constant 0 : index
    %0 = vector.load %arg0[%c0, %c0_0] : memref<12x512xf32, #tpu.memory_space<vmem>>, vector<12x512xf32>
    %1 = vector.extract_strided_slice %0 {offsets = [0, 60], sizes = [12, 390], strides = [1, 1]} : vector<12x512xf32> to vector<12x390xf32>
    %cst = arith.constant 0.270682156 : f32
    %2 = vector.broadcast %cst : f32 to vector<12x390xf32>
    %3 = arith.mulf %2, %1 : vector<12x390xf32>
    %4 = vector.extract_strided_slice %0 {offsets = [0, 0], sizes = [12, 390], strides = [1, 1]} : vector<12x512xf32> to vector<12x390xf32>
    %5 = vector.extract_strided_slice %0 {offsets = [0, 120], sizes = [12, 390], strides = [1, 1]} : vector<12x512xf32> to vector<12x390xf32>
    %6 = arith.addf %4, %5 : vector<12x390xf32>
    %cst_1 = arith.constant 0.036632847 : f32
    %7 = vector.broadcast %cst_1 : f32 to vector<12x390xf32>
    %8 = arith.mulf %7, %6 : vector<12x390xf32>
    %9 = arith.addf %3, %8 : vector<12x390xf32>
    %10 = vector.extract_strided_slice %0 {offsets = [0, 20], sizes = [12, 390], strides = [1, 1]} : vector<12x512xf32> to vector<12x390xf32>
    %11 = vector.extract_strided_slice %0 {offsets = [0, 100], sizes = [12, 390], strides = [1, 1]} : vector<12x512xf32> to vector<12x390xf32>
    %12 = arith.addf %10, %11 : vector<12x390xf32>
    %cst_2 = arith.constant 0.111280762 : f32
    %13 = vector.broadcast %cst_2 : f32 to vector<12x390xf32>
    %14 = arith.mulf %13, %12 : vector<12x390xf32>
    %15 = arith.addf %9, %14 : vector<12x390xf32>
    %16 = vector.extract_strided_slice %0 {offsets = [0, 40], sizes = [12, 390], strides = [1, 1]} : vector<12x512xf32> to vector<12x390xf32>
    %17 = vector.extract_strided_slice %0 {offsets = [0, 80], sizes = [12, 390], strides = [1, 1]} : vector<12x512xf32> to vector<12x390xf32>
    %18 = arith.addf %16, %17 : vector<12x390xf32>
    %cst_3 = arith.constant 0.216745317 : f32
    %19 = vector.broadcast %cst_3 : f32 to vector<12x390xf32>
    %20 = arith.mulf %19, %18 : vector<12x390xf32>
    %21 = arith.addf %15, %20 : vector<12x390xf32>
    %22 = vector.extract_strided_slice %21 {offsets = [0, 3], sizes = [12, 384], strides = [1, 1]} : vector<12x390xf32> to vector<12x384xf32>
    %cst_4 = arith.constant 0.270682156 : f32
    %23 = vector.broadcast %cst_4 : f32 to vector<12x384xf32>
    %24 = arith.mulf %23, %22 : vector<12x384xf32>
    %25 = vector.extract_strided_slice %21 {offsets = [0, 0], sizes = [12, 384], strides = [1, 1]} : vector<12x390xf32> to vector<12x384xf32>
    %26 = vector.extract_strided_slice %21 {offsets = [0, 6], sizes = [12, 384], strides = [1, 1]} : vector<12x390xf32> to vector<12x384xf32>
    %27 = arith.addf %25, %26 : vector<12x384xf32>
    %cst_5 = arith.constant 0.036632847 : f32
    %28 = vector.broadcast %cst_5 : f32 to vector<12x384xf32>
    %29 = arith.mulf %28, %27 : vector<12x384xf32>
    %30 = arith.addf %24, %29 : vector<12x384xf32>
    %31 = vector.extract_strided_slice %21 {offsets = [0, 1], sizes = [12, 384], strides = [1, 1]} : vector<12x390xf32> to vector<12x384xf32>
    %32 = vector.extract_strided_slice %21 {offsets = [0, 5], sizes = [12, 384], strides = [1, 1]} : vector<12x390xf32> to vector<12x384xf32>
    %33 = arith.addf %31, %32 : vector<12x384xf32>
    %cst_6 = arith.constant 0.111280762 : f32
    %34 = vector.broadcast %cst_6 : f32 to vector<12x384xf32>
    %35 = arith.mulf %34, %33 : vector<12x384xf32>
    %36 = arith.addf %30, %35 : vector<12x384xf32>
    %37 = vector.extract_strided_slice %21 {offsets = [0, 2], sizes = [12, 384], strides = [1, 1]} : vector<12x390xf32> to vector<12x384xf32>
    %38 = vector.extract_strided_slice %21 {offsets = [0, 4], sizes = [12, 384], strides = [1, 1]} : vector<12x390xf32> to vector<12x384xf32>
    %39 = arith.addf %37, %38 : vector<12x384xf32>
    %cst_7 = arith.constant 0.216745317 : f32
    %40 = vector.broadcast %cst_7 : f32 to vector<12x384xf32>
    %41 = arith.mulf %40, %39 : vector<12x384xf32>
    %42 = arith.addf %36, %41 : vector<12x384xf32>
    %c0_8 = arith.constant 0 : index
    %c0_9 = arith.constant 0 : index
    %43 = vector.load %arg1[%c0_8, %c0_9] : memref<12x384xf32, #tpu.memory_space<vmem>>, vector<12x384xf32>
    tpu.vector_store %arg1[%c0_8, %c0_9], %42 {strides = array<i32>} : memref<12x384xf32, #tpu.memory_space<vmem>>, vector<12x384xf32>,
    return
  }
}

module attributes {stable_mosaic.version = 11 : i64} {
  func.func @_aligned_l1_kernel(%arg0: i32, %arg1: i32, %arg2: memref<2x9xf32, #tpu.memory_space<smem>>, %arg3: memref<1x3x64x128xf32, #tpu.memory_space<vmem>>, %arg4: memref<1x3x64x128xf32, #tpu.memory_space<vmem>>, %arg5: memref<1x64x128xf32, #tpu.memory_space<vmem>>, %arg6: memref<1x64x128xf32, #tpu.memory_space<vmem>>) attributes {dimension_semantics = [#tpu.dimension_semantics<parallel>, #tpu.dimension_semantics<arbitrary>], iteration_bounds = array<i64: 2, 2>, scalar_prefetch = 1 : i64, scratch_operands = 0 : i64, tpu.core_type = #tpu.core_type<tc>, window_params = [{transform_indices = @transform_0, window_bounds = array<i64: 1, 3, 64, 128>}, {transform_indices = @transform_1, window_bounds = array<i64: 1, 3, 64, 128>}, {transform_indices = @transform_2, window_bounds = array<i64: 1, 64, 128>}, {transform_indices = @transform_3, window_bounds = array<i64: 1, 64, 128>}]} {
    %c0_i32 = arith.constant 0 : i32
    %0 = arith.cmpi eq, %arg1, %c0_i32 : i32
    %1 = arith.extui %0 : i1 to i32
    %c0_i32_0 = arith.constant 0 : i32
    %2 = arith.cmpi ne, %1, %c0_i32_0 : i32
    scf.if %2 {
      %cst_36 = arith.constant 0.000000e+00 : f32
      %80 = vector.broadcast %cst_36 : f32 to vector<64x128xf32>
      %c0_37 = arith.constant 0 : index
      %c0_38 = arith.constant 0 : index
      %c0_39 = arith.constant 0 : index
      %81 = vector.load %arg6[%c0_37, %c0_38, %c0_39] : memref<1x64x128xf32, #tpu.memory_space<vmem>>, vector<1x64x128xf32>
      %82 = vector.shape_cast %81 : vector<1x64x128xf32> to vector<64x128xf32>
      %83 = vector.shape_cast %80 : vector<64x128xf32> to vector<1x64x128xf32>
      tpu.vector_store %arg6[%c0_37, %c0_38, %c0_39], %83 {strides = array<i32>} : memref<1x64x128xf32, #tpu.memory_space<vmem>>, vector<1x64x128xf32>,
    } else {
    }
    %3 = arith.index_cast %arg0 : i32 to index
    %c0 = arith.constant 0 : index
    %4 = memref.load %arg2[%3, %c0] : memref<2x9xf32, #tpu.memory_space<smem>>
    %5 = arith.index_cast %arg0 : i32 to index
    %c1 = arith.constant 1 : index
    %6 = memref.load %arg2[%5, %c1] : memref<2x9xf32, #tpu.memory_space<smem>>
    %7 = arith.index_cast %arg0 : i32 to index
    %c2 = arith.constant 2 : index
    %8 = memref.load %arg2[%7, %c2] : memref<2x9xf32, #tpu.memory_space<smem>>
    %9 = arith.index_cast %arg0 : i32 to index
    %c3 = arith.constant 3 : index
    %10 = memref.load %arg2[%9, %c3] : memref<2x9xf32, #tpu.memory_space<smem>>
    %11 = arith.index_cast %arg0 : i32 to index
    %c4 = arith.constant 4 : index
    %12 = memref.load %arg2[%11, %c4] : memref<2x9xf32, #tpu.memory_space<smem>>
    %13 = arith.index_cast %arg0 : i32 to index
    %c5 = arith.constant 5 : index
    %14 = memref.load %arg2[%13, %c5] : memref<2x9xf32, #tpu.memory_space<smem>>
    %15 = arith.index_cast %arg0 : i32 to index
    %c6 = arith.constant 6 : index
    %16 = memref.load %arg2[%15, %c6] : memref<2x9xf32, #tpu.memory_space<smem>>
    %17 = arith.index_cast %arg0 : i32 to index
    %c7 = arith.constant 7 : index
    %18 = memref.load %arg2[%17, %c7] : memref<2x9xf32, #tpu.memory_space<smem>>
    %19 = arith.index_cast %arg0 : i32 to index
    %c8 = arith.constant 8 : index
    %20 = memref.load %arg2[%19, %c8] : memref<2x9xf32, #tpu.memory_space<smem>>
    %c0_1 = arith.constant 0 : index
    %c0_2 = arith.constant 0 : index
    %c0_3 = arith.constant 0 : index
    %c0_4 = arith.constant 0 : index
    %21 = vector.load %arg3[%c0_1, %c0_2, %c0_3, %c0_4] : memref<1x3x64x128xf32, #tpu.memory_space<vmem>>, vector<1x1x64x128xf32>
    %22 = vector.shape_cast %21 : vector<1x1x64x128xf32> to vector<64x128xf32>
    %c0_5 = arith.constant 0 : index
    %c1_6 = arith.constant 1 : index
    %c0_7 = arith.constant 0 : index
    %c0_8 = arith.constant 0 : index
    %23 = vector.load %arg3[%c0_5, %c1_6, %c0_7, %c0_8] : memref<1x3x64x128xf32, #tpu.memory_space<vmem>>, vector<1x1x64x128xf32>
    %24 = vector.shape_cast %23 : vector<1x1x64x128xf32> to vector<64x128xf32>
    %c0_9 = arith.constant 0 : index
    %c2_10 = arith.constant 2 : index
    %c0_11 = arith.constant 0 : index
    %c0_12 = arith.constant 0 : index
    %25 = vector.load %arg3[%c0_9, %c2_10, %c0_11, %c0_12] : memref<1x3x64x128xf32, #tpu.memory_space<vmem>>, vector<1x1x64x128xf32>
    %26 = vector.shape_cast %25 : vector<1x1x64x128xf32> to vector<64x128xf32>
    %27 = vector.broadcast %4 : f32 to vector<64x128xf32>
    %28 = arith.mulf %27, %22 : vector<64x128xf32>
    %29 = vector.broadcast %10 : f32 to vector<64x128xf32>
    %30 = arith.mulf %29, %24 : vector<64x128xf32>
    %31 = arith.addf %28, %30 : vector<64x128xf32>
    %32 = vector.broadcast %16 : f32 to vector<64x128xf32>
    %33 = arith.mulf %32, %26 : vector<64x128xf32>
    %34 = arith.addf %31, %33 : vector<64x128xf32>
    %c0_13 = arith.constant 0 : index
    %c0_14 = arith.constant 0 : index
    %c0_15 = arith.constant 0 : index
    %c0_16 = arith.constant 0 : index
    %35 = vector.load %arg4[%c0_13, %c0_14, %c0_15, %c0_16] : memref<1x3x64x128xf32, #tpu.memory_space<vmem>>, vector<1x1x64x128xf32>
    %36 = vector.shape_cast %35 : vector<1x1x64x128xf32> to vector<64x128xf32>
    %37 = arith.subf %34, %36 : vector<64x128xf32>
    %38 = math.absf %37 : vector<64x128xf32>
    %cst = arith.constant 9.99999996E-13 : f32
    %39 = vector.broadcast %cst : f32 to vector<64x128xf32>
    %40 = arith.addf %38, %39 : vector<64x128xf32>
    %41 = vector.broadcast %6 : f32 to vector<64x128xf32>
    %42 = arith.mulf %41, %22 : vector<64x128xf32>
    %43 = vector.broadcast %12 : f32 to vector<64x128xf32>
    %44 = arith.mulf %43, %24 : vector<64x128xf32>
    %45 = arith.addf %42, %44 : vector<64x128xf32>
    %46 = vector.broadcast %18 : f32 to vector<64x128xf32>
    %47 = arith.mulf %46, %26 : vector<64x128xf32>
    %48 = arith.addf %45, %47 : vector<64x128xf32>
    %c0_17 = arith.constant 0 : index
    %c1_18 = arith.constant 1 : index
    %c0_19 = arith.constant 0 : index
    %c0_20 = arith.constant 0 : index
    %49 = vector.load %arg4[%c0_17, %c1_18, %c0_19, %c0_20] : memref<1x3x64x128xf32, #tpu.memory_space<vmem>>, vector<1x1x64x128xf32>
    %50 = vector.shape_cast %49 : vector<1x1x64x128xf32> to vector<64x128xf32>
    %51 = arith.subf %48, %50 : vector<64x128xf32>
    %52 = math.absf %51 : vector<64x128xf32>
    %cst_21 = arith.constant 9.99999996E-13 : f32
    %53 = vector.broadcast %cst_21 : f32 to vector<64x128xf32>
    %54 = arith.addf %52, %53 : vector<64x128xf32>
    %55 = arith.addf %40, %54 : vector<64x128xf32>
    %56 = vector.broadcast %8 : f32 to vector<64x128xf32>
    %57 = arith.mulf %56, %22 : vector<64x128xf32>
    %58 = vector.broadcast %14 : f32 to vector<64x128xf32>
    %59 = arith.mulf %58, %24 : vector<64x128xf32>
    %60 = arith.addf %57, %59 : vector<64x128xf32>
    %61 = vector.broadcast %20 : f32 to vector<64x128xf32>
    %62 = arith.mulf %61, %26 : vector<64x128xf32>
    %63 = arith.addf %60, %62 : vector<64x128xf32>
    %c0_22 = arith.constant 0 : index
    %c2_23 = arith.constant 2 : index
    %c0_24 = arith.constant 0 : index
    %c0_25 = arith.constant 0 : index
    %64 = vector.load %arg4[%c0_22, %c2_23, %c0_24, %c0_25] : memref<1x3x64x128xf32, #tpu.memory_space<vmem>>, vector<1x1x64x128xf32>
    %65 = vector.shape_cast %64 : vector<1x1x64x128xf32> to vector<64x128xf32>
    %66 = arith.subf %63, %65 : vector<64x128xf32>
    %67 = math.absf %66 : vector<64x128xf32>
    %cst_26 = arith.constant 9.99999996E-13 : f32
    %68 = vector.broadcast %cst_26 : f32 to vector<64x128xf32>
    %69 = arith.addf %67, %68 : vector<64x128xf32>
    %70 = arith.addf %55, %69 : vector<64x128xf32>
    %c0_27 = arith.constant 0 : index
    %c0_28 = arith.constant 0 : index
    %c0_29 = arith.constant 0 : index
    %71 = vector.load %arg6[%c0_27, %c0_28, %c0_29] : memref<1x64x128xf32, #tpu.memory_space<vmem>>, vector<1x64x128xf32>
    %72 = vector.shape_cast %71 : vector<1x64x128xf32> to vector<64x128xf32>
    %c0_30 = arith.constant 0 : index
    %c0_31 = arith.constant 0 : index
    %c0_32 = arith.constant 0 : index
    %73 = vector.load %arg5[%c0_30, %c0_31, %c0_32] : memref<1x64x128xf32, #tpu.memory_space<vmem>>, vector<1x64x128xf32>
    %74 = vector.shape_cast %73 : vector<1x64x128xf32> to vector<64x128xf32>
    %75 = arith.mulf %70, %74 : vector<64x128xf32>
    %76 = arith.addf %72, %75 : vector<64x128xf32>
    %c0_33 = arith.constant 0 : index
    %c0_34 = arith.constant 0 : index
    %c0_35 = arith.constant 0 : index
    %77 = vector.load %arg6[%c0_33, %c0_34, %c0_35] : memref<1x64x128xf32, #tpu.memory_space<vmem>>, vector<1x64x128xf32>
    %78 = vector.shape_cast %77 : vector<1x64x128xf32> to vector<64x128xf32>
    %79 = vector.shape_cast %76 : vector<64x128xf32> to vector<1x64x128xf32>
    tpu.vector_store %arg6[%c0_33, %c0_34, %c0_35], %79 {strides = array<i32>} : memref<1x64x128xf32, #tpu.memory_space<vmem>>, vector<1x64x128xf32>,
    return
  }
  func.func @transform_0(%arg0: i32, %arg1: i32, %arg2: memref<2x9xf32, #tpu.memory_space<smem>>) -> (i32, i32, i32, i32) {
    %c0_i32 = arith.constant 0 : i32
    %c0_i32_0 = arith.constant 0 : i32
    %c0_i32_1 = arith.constant 0 : i32
    return %arg0, %c0_i32, %arg1, %c0_i32_0 : i32, i32, i32, i32
  }
  func.func @transform_1(%arg0: i32, %arg1: i32, %arg2: memref<2x9xf32, #tpu.memory_space<smem>>) -> (i32, i32, i32, i32) {
    %c0_i32 = arith.constant 0 : i32
    %c0_i32_0 = arith.constant 0 : i32
    %c0_i32_1 = arith.constant 0 : i32
    return %arg0, %c0_i32, %arg1, %c0_i32_0 : i32, i32, i32, i32
  }
  func.func @transform_2(%arg0: i32, %arg1: i32, %arg2: memref<2x9xf32, #tpu.memory_space<smem>>) -> (i32, i32, i32) {
    %c0_i32 = arith.constant 0 : i32
    %c0_i32_0 = arith.constant 0 : i32
    return %arg0, %arg1, %c0_i32 : i32, i32, i32
  }
  func.func @transform_3(%arg0: i32, %arg1: i32, %arg2: memref<2x9xf32, #tpu.memory_space<smem>>) -> (i32, i32, i32) {
    %c0_i32 = arith.constant 0 : i32
    %c0_i32_0 = arith.constant 0 : i32
    %c0_i32_1 = arith.constant 0 : i32
    return %arg0, %c0_i32, %c0_i32_0 : i32, i32, i32
  }
}

</mosaic_0001>

<bundles_post_ra>
// kernel: aligned_l1.2
= control target key start
LH: loop header
LB: loop body
LE: loop exit
PB: predicated region body
PF: predicated region fallthrough
CT: control target
= control target key end

     0   :  { %s672_s10 = smov 8   ;;  %s673_s23 = smov 48   ;;  %vm48_vm0 = vcmask 64512   ;;  %vm142_vm1 = vcmask 392192   ;;  %vm236_vm2 = vcmask 719872   ;;  %vm103_vm3 = vcmask 490496   ;;  %s1083_s0 = inlined_call_operand.vmem [shape: f32[12,512], index: 0, kind: input, shape index: {}]   ;;  %s1084_s1 = inlined_call_operand.vmem [shape: f32[12,384], index: 1, kind: output, shape index: {}]  }
   0x1   :  { %v698_v0 = vld [vmem:[%s1083_s0 + $0x10] sm:$0xff]  ;;  %v703_v1 = vld [vmem:[%s1083_s0] sm:$0xff]  ;;  %v710_v2 = vld [vmem:[%s1083_s0 + $0x18] sm:$0xff]  ;;  %s675_s24 = smov 60   ;;  %s676_s25 = smov 40   ;;  %vm197_vm4 = vcmask 326656  }
   0x2   :  { %36 = vrot.lane.b32.xlu1 %v698_v0, %s672_s10  ;;  %32 = vrot.lane.b32.xlu0 %v703_v1, %s672_s10  ;;  %v715_v3 = vld [vmem:[%s1083_s0 + $0x8] sm:$0xff]  ;;  %v727_v5 = vld [vmem:[%s1083_s0 + $0x20] sm:$0xf]  ;;  %s677_s26 = smov 20   ;;  %s678_s27 = smov 122   ;;  %vm291_vm5 = vcmask 162816  }
   0x3   :  { %v722_v4 = vld [vmem:[%s1083_s0 + $0x28] sm:$0xf]  ;;  %v734_v6 = vld [vmem:[%s1083_s0 + $0x38] sm:$0xf]  ;;  %v739_v7 = vld [vmem:[%s1083_s0 + $0x30] sm:$0xf] }
   0x4   :  { %s674_s0 = smov 88   ;;  %s679_s28 = smov 124   ;;  %vm346_vm6 = vcmask 998400   ;;  %vm440_vm7 = vcmask 1014784   ;;  %vm534_vm8 = vcmask 1031168   ;;  %vm401_vm9 = vcmask 23552  }
   0x5   :  { %s680_s29 = smov 126   ;;  %s681_s30 = smov 3   ;;  %vm495_vm10 = vcmask 15360   ;;  %vm589_vm11 = vcmask 7168   ;;  %vm636_vm12 = vcmask 531456  }
   0x6   :  { %38 = vrot.lane.b32.xlu1 %v710_v2, %s672_s10  ;;  %34 = vrot.lane.b32.xlu0 %v715_v3, %s672_s10  ;;  %s682_s2 = smov 2   ;;  %s683_s3 = smov 1  }
   0x7   :  { %s684_s4 = smov 65  }
   0xa   :  { %42 = vrot.lane.b32.xlu1 %v722_v4, %s672_s10  ;;  %40 = vrot.lane.b32.xlu0 %v727_v5, %s672_s10 }
   0xe   :  { %46 = vrot.lane.b32.xlu1 %v734_v6, %s672_s10  ;;  %44 = vrot.lane.b32.xlu0 %v739_v7, %s672_s10 }
  0x12   :  { %128 = vrot.lane.b32.xlu1 %v715_v3, %s673_s23  ;;  %126 = vrot.lane.b32.xlu0 %v703_v1, %s673_s23 }
  0x16   :  { %132 = vrot.lane.b32.xlu1 %v710_v2, %s673_s23  ;;  %130 = vrot.lane.b32.xlu0 %v698_v0, %s673_s23 }
  0x1a   :  { %136 = vrot.lane.b32.xlu1 %v722_v4, %s673_s23  ;;  %134 = vrot.lane.b32.xlu0 %v727_v5, %s673_s23 }
  0x1e   :  { %140 = vrot.lane.b32.xlu1 %v734_v6, %s673_s23  ;;  %138 = vrot.lane.b32.xlu0 %v739_v7, %s673_s23 }
  0x22   :  { %222 = vrot.lane.b32.xlu1 %v715_v3, %s674_s0  ;;  %220 = vrot.lane.b32.xlu0 %v703_v1, %s674_s0 }
  0x26   :  { %226 = vrot.lane.b32.xlu1 %v710_v2, %s674_s0  ;;  %224 = vrot.lane.b32.xlu0 %v698_v0, %s674_s0 }
  0x2a   :  { %230 = vrot.lane.b32.xlu1 %v722_v4, %s674_s0  ;;  %228 = vrot.lane.b32.xlu0 %v727_v5, %s674_s0 }
  0x2e   :  { %234 = vrot.lane.b32.xlu1 %v734_v6, %s674_s0  ;;  %232 = vrot.lane.b32.xlu0 %v739_v7, %s674_s0 }
  0x74   :  { %v759_v8 = vpop.permute.xlu1 %36  ;;  %v33_v9 = vpop.permute.xlu0 %32 }
  0x78   :  { %v39_v10 = vpop.permute.xlu1 %38  ;;  %v761_v11 = vpop.permute.xlu0 %34 }
  0x79   :  { %v51_v12 = vsel %vm48_vm0, %v759_v8, %v39_v10  ;;  %v66_v13 = vadd.f32 %v39_v10, %v710_v2  ;;  %v49_v14 = vsel %vm48_vm0, %v33_v9, %v761_v11  ;;  %v50_v58 = vsel %vm48_vm0, %v761_v11, %v759_v8 }
  0x7a   :  { %v63_v15 = vadd.f32 %v49_v14, %v703_v1  ;;  %v65_v20 = vadd.f32 %v51_v12, %v698_v0  ;;  %v64_v12 = vadd.f32 %v50_v58, %v715_v3 }
  0x7b   :  { %v74_v16 = vmul.f32 0.036632847, %v66_v13 }
  0x7c   :  { %v769_v17 = vpop.permute.xlu1 %42  ;;  %v41_v18 = vpop.permute.xlu0 %40  ;;  %v71_v19 = vmul.f32 0.036632847, %v63_v15  ;;  %v73_v25 = vmul.f32 0.036632847, %v65_v20  ;;  %v72_v20 = vmul.f32 0.036632847, %v64_v12 }
  0x7d   :  { %v52_v21 = vsel %vm48_vm0, %v41_v18, %v769_v17  ;;  %93 = vrot.lane.b32.xlu1 %v74_v16, %s675_s24 }
  0x7e   :  { %87 = vrot.lane.b32.xlu0 %v71_v19, %s675_s24  ;;  %v67_v22 = vadd.f32 %v52_v21, %v727_v5 }
  0x80   :  { %v47_v23 = vpop.permute.xlu1 %46  ;;  %v45_v24 = vpop.permute.xlu0 %44  ;;  %v75_v29 = vmul.f32 0.036632847, %v67_v22 }
  0x81   :  { %v70_v26 = vadd.f32 %v47_v23, %v734_v6  ;;  %v54_v27 = vsel %vm48_vm0, %v45_v24, %v47_v23  ;;  %v53_v13 = vsel %vm48_vm0, %v769_v17, %v45_v24 }
  0x82   :  { %91 = vrot.lane.b32.xlu0 %v73_v25, %s675_s24  ;;  %v69_v30 = vadd.f32 %v54_v27, %v739_v7  ;;  %v68_v19 = vadd.f32 %v53_v13, %v722_v4 }
  0x83   :  { %v78_v28 = vmul.f32 0.036632847, %v70_v26 }
  0x84   :  { %v129_v31 = vpop.permute.xlu1 %128  ;;  %v127_v32 = vpop.permute.xlu0 %126  ;;  %v77_v34 = vmul.f32 0.036632847, %v69_v30  ;;  %v76_v27 = vmul.f32 0.036632847, %v68_v19 }
  0x85   :  { %v143_v33 = vsel %vm142_vm1, %v127_v32, %v129_v31  ;;  %101 = vrot.lane.b32.xlu1 %v78_v28, %s675_s24 }
  0x86   :  { %95 = vrot.lane.b32.xlu0 %v75_v29, %s675_s24  ;;  %v157_v35 = vadd.f32 %v143_v33, %v703_v1 }
  0x88   :  { %v133_v36 = vpop.permute.xlu1 %132  ;;  %v131_v37 = vpop.permute.xlu0 %130  ;;  %v165_v41 = vmul.f32 0.11128076, %v157_v35 }
  0x89   :  { %v160_v38 = vadd.f32 %v133_v36, %v710_v2  ;;  %v145_v39 = vsel %vm142_vm1, %v131_v37, %v133_v36  ;;  %v144_v21 = vsel %vm142_vm1, %v129_v31, %v131_v37 }
  0x8a   :  { %99 = vrot.lane.b32.xlu0 %v77_v34, %s675_s24  ;;  %v159_v42 = vadd.f32 %v145_v39, %v698_v0  ;;  %v158_v28 = vadd.f32 %v144_v21, %v715_v3 }
  0x8b   :  { %v168_v40 = vmul.f32 0.11128076, %v160_v38 }
  0x8c   :  { %v137_v43 = vpop.permute.xlu1 %136  ;;  %v135_v44 = vpop.permute.xlu0 %134  ;;  %v167_v46 = vmul.f32 0.11128076, %v159_v42  ;;  %v166_v31 = vmul.f32 0.11128076, %v158_v28 }
  0x8d   :  { %v146_v45 = vsel %vm142_vm1, %v135_v44, %v137_v43  ;;  %187 = vrot.lane.b32.xlu1 %v168_v40, %s676_s25 }
  0x8e   :  { %181 = vrot.lane.b32.xlu0 %v165_v41, %s676_s25  ;;  %v161_v47 = vadd.f32 %v146_v45, %v727_v5 }
  0x90   :  { %v141_v48 = vpop.permute.xlu1 %140  ;;  %v139_v49 = vpop.permute.xlu0 %138  ;;  %v169_v53 = vmul.f32 0.11128076, %v161_v47 }
  0x91   :  { %v164_v50 = vadd.f32 %v141_v48, %v734_v6  ;;  %v148_v51 = vsel %vm142_vm1, %v139_v49, %v141_v48  ;;  %v147_v29 = vsel %vm142_vm1, %v137_v43, %v139_v49 }
  0x92   :  { %185 = vrot.lane.b32.xlu0 %v167_v46, %s676_s25  ;;  %v163_v54 = vadd.f32 %v148_v51, %v739_v7  ;;  %v162_v32 = vadd.f32 %v147_v29, %v722_v4 }
  0x93   :  { %v172_v52 = vmul.f32 0.11128076, %v164_v50 }
  0x94   :  { %v223_v55 = vpop.permute.xlu1 %222  ;;  %v221_v56 = vpop.permute.xlu0 %220  ;;  %v171_v59 = vmul.f32 0.11128076, %v163_v54  ;;  %v170_v35 = vmul.f32 0.11128076, %v162_v32  ;;  %v22_v32 = vmul.f32 0.27068216, %v739_v7 }
  0x95   :  { %v237_v57 = vsel %vm236_vm2, %v221_v56, %v223_v55  ;;  %195 = vrot.lane.b32.xlu1 %v172_v52, %s676_s25  ;;  %v16_v52 = vmul.f32 0.27068216, %v703_v1 }
  0x96   :  { %189 = vrot.lane.b32.xlu0 %v169_v53, %s676_s25  ;;  %v251_v60 = vadd.f32 %v237_v57, %v703_v1 }
  0x98   :  { %v227_v61 = vpop.permute.xlu1 %226  ;;  %v225_v62 = vpop.permute.xlu0 %224  ;;  %v259_v14 = vmul.f32 0.21674532, %v251_v60 }
  0x99   :  { %v254_v63 = vadd.f32 %v227_v61, %v710_v2  ;;  %v239_v9 = vsel %vm236_vm2, %v225_v62, %v227_v61  ;;  %v238_v33 = vsel %vm236_vm2, %v223_v55, %v225_v62 }
  0x9a   :  { %193 = vrot.lane.b32.xlu0 %v171_v59, %s676_s25  ;;  %v253_v8 = vadd.f32 %v239_v9, %v698_v0  ;;  %v252_v36 = vadd.f32 %v238_v33, %v715_v3  ;;  %v20_v59 = vmul.f32 0.27068216, %v727_v5 }
  0x9b   :  { %v262_v10 = vmul.f32 0.21674532, %v254_v63 }
  0x9c   :  { %v231_v11 = vpop.permute.xlu1 %230  ;;  %v229_v15 = vpop.permute.xlu0 %228  ;;  %v261_v17 = vmul.f32 0.21674532, %v253_v8  ;;  %v260_v38 = vmul.f32 0.21674532, %v252_v36 }
  0x9d   :  { %281 = vrot.lane.b32.xlu1 %v262_v10, %s677_s26  ;;  %v240_v16 = vsel %vm236_vm2, %v229_v15, %v231_v11  ;;  %v19_v15 = vmul.f32 0.27068216, %v710_v2 }
  0x9e   :  { %275 = vrot.lane.b32.xlu0 %v259_v14, %s677_s26  ;;  %v255_v18 = vadd.f32 %v240_v16, %v727_v5  ;;  %v17_v5 = vmul.f32 0.27068216, %v715_v3 }
  0xa0   :  { %v235_v22 = vpop.permute.xlu1 %234  ;;  %v233_v23 = vpop.permute.xlu0 %232  ;;  %v263_v25 = vmul.f32 0.21674532, %v255_v18 }
  0xa1   :  { %89 = vrot.lane.b32.xlu1 %v72_v20, %s675_s24  ;;  %v242_v24 = vsel %vm236_vm2, %v233_v23, %v235_v22  ;;  %v241_v34 = vsel %vm236_vm2, %v231_v11, %v233_v23  ;;  %v258_v39 = vadd.f32 %v235_v22, %v734_v6  ;;  %v18_v22 = vmul.f32 0.27068216, %v698_v0 }
  0xa2   :  { %279 = vrot.lane.b32.xlu0 %v261_v17, %s677_s26  ;;  %v257_v26 = vadd.f32 %v242_v24, %v739_v7  ;;  %v256_v37 = vadd.f32 %v241_v34, %v722_v4  ;;  %v21_v23 = vmul.f32 0.27068216, %v722_v4  ;;  %v23_v0 = vmul.f32 0.27068216, %v734_v6 }
  0xa3   :  { %v266_v41 = vmul.f32 0.21674532, %v258_v39 }
  0xa4   :  { %v265_v30 = vmul.f32 0.21674532, %v257_v26  ;;  %v264_v40 = vmul.f32 0.21674532, %v256_v37 }
  0xa5   :  { %97 = vrot.lane.b32.xlu1 %v76_v27, %s675_s24 }
  0xa6   :  { %283 = vrot.lane.b32.xlu0 %v263_v25, %s677_s26 }
  0xa9   :  { %183 = vrot.lane.b32.xlu1 %v166_v31, %s676_s25 }
  0xaa   :  { %287 = vrot.lane.b32.xlu0 %v265_v30, %s677_s26 }
  0xad   :  { %191 = vrot.lane.b32.xlu1 %v170_v35, %s676_s25 }
  0xb1   :  { %277 = vrot.lane.b32.xlu1 %v260_v38, %s677_s26 }
  0xb5   :  { %285 = vrot.lane.b32.xlu1 %v264_v40, %s677_s26 }
  0xb9   :  { %289 = vrot.lane.b32.xlu1 %v266_v41, %s677_s26 }
  0xef   :  { %v94_v46 = vpop.permute.xlu1 %93 }
  0xf0   :  { %v88_v42 = vpop.permute.xlu0 %87 }
  0xf1   :  { %v118_v55 = vadd.f32 %v88_v42, %v16_v52 }
  0xf4   :  { %v92_v43 = vpop.permute.xlu0 %91 }
  0xf5   :  { %v106_v18 = vsel %vm103_vm3, %v92_v43, %v94_v46 }
  0xf6   :  { %v121_v17 = vadd.f32 %v106_v18, %v19_v15 }
  0xf7   :  { %v102_v48 = vpop.permute.xlu1 %101 }
  0xf8   :  { %v96_v44 = vpop.permute.xlu0 %95 }
  0xf9   :  { %v122_v63 = vadd.f32 %v96_v44, %v20_v59 }
  0xfc   :  { %v837_v45 = vpop.permute.xlu0 %99 }
  0xfd   :  { %v109_v34 = vsel %vm103_vm3, %v837_v45, %v102_v48 }
  0xff   :  { %v188_v50 = vpop.permute.xlu1 %187 }
 0x100   :  { %v182_v47 = vpop.permute.xlu0 %181 }
 0x101   :  { %v212_v56 = vadd.f32 %v182_v47, %v118_v55 }
 0x104   :  { %v186_v49 = vpop.permute.xlu0 %185 }
 0x105   :  { %v200_v3 = vsel %vm197_vm4, %v186_v49, %v188_v50 }
 0x106   :  { %v215_v27 = vadd.f32 %v200_v3, %v121_v17 }
 0x107   :  { %v840_v53 = vpop.permute.xlu1 %195 }
 0x108   :  { %v190_v51 = vpop.permute.xlu0 %189 }
 0x109   :  { %v216_v1 = vadd.f32 %v190_v51, %v122_v63 }
 0x10c   :  { %v842_v54 = vpop.permute.xlu0 %193 }
 0x10d   :  { %v203_v7 = vsel %vm197_vm4, %v842_v54, %v840_v53 }
 0x10f   :  { %v282_v57 = vpop.permute.xlu1 %281 }
 0x110   :  { %v276_v58 = vpop.permute.xlu0 %275 }
 0x111   :  { %v845_v60 = vadd.f32 %v276_v58, %v212_v56 }
 0x113   :  { %v90_v61 = vpop.permute.xlu1 %89  ;;  %330 = vrot.lane.b32.xlu0 %v845_v60, %s678_s27 }
 0x114   :  { %v280_v62 = vpop.permute.xlu0 %279  ;;  %v104_v14 = vsel %vm103_vm3, %v88_v42, %v90_v61  ;;  %v105_v2 = vsel %vm103_vm3, %v90_v61, %v92_v43  ;;  %v125_v42 = vadd.f32 %v109_v34, %v23_v0 }
 0x115   :  { %v119_v16 = vadd.f32 %v104_v14, %v17_v5  ;;  %v294_v25 = vsel %vm291_vm5, %v280_v62, %v282_v57  ;;  %v120_v30 = vadd.f32 %v105_v2, %v18_v22 }
 0x116   :  { %v878_v31 = vadd.f32 %v294_v25, %v215_v27  ;;  %v219_v48 = vadd.f32 %v203_v7, %v125_v42 }
 0x117   :  { %v98_v9 = vpop.permute.xlu1 %97 }
 0x118   :  { %v284_v10 = vpop.permute.xlu0 %283  ;;  %v107_v26 = vsel %vm103_vm3, %v96_v44, %v98_v9  ;;  %v108_v35 = vsel %vm103_vm3, %v98_v9, %v837_v45 }
 0x119   :  { %v849_v12 = vadd.f32 %v284_v10, %v216_v1  ;;  %v123_v33 = vadd.f32 %v107_v26, %v21_v23  ;;  %v124_v43 = vadd.f32 %v108_v35, %v22_v32 }
 0x11b   :  { %v184_v13 = vpop.permute.xlu1 %183  ;;  %338 = vrot.lane.b32.xlu0 %v849_v12, %s678_s27 }
 0x11c   :  { %v198_v11 = vsel %vm197_vm4, %v182_v47, %v184_v13  ;;  %v199_v4 = vsel %vm197_vm4, %v184_v13, %v186_v49  ;;  %v288_v39 = vpop.permute.xlu0 %287 }
 0x11d   :  { %v213_v19 = vadd.f32 %v198_v11, %v119_v16  ;;  %v214_v37 = vadd.f32 %v199_v4, %v120_v30 }
 0x11f   :  { %v192_v8 = vpop.permute.xlu1 %191  ;;  %424 = vrot.lane.b32.xlu0 %v845_v60, %s679_s28 }
 0x120   :  { %v201_v29 = vsel %vm197_vm4, %v190_v51, %v192_v8  ;;  %v202_v41 = vsel %vm197_vm4, %v192_v8, %v842_v54 }
 0x121   :  { %v217_v38 = vadd.f32 %v201_v29, %v123_v33  ;;  %v218_v49 = vadd.f32 %v202_v41, %v124_v43 }
 0x123   :  { %v278_v20 = vpop.permute.xlu1 %277  ;;  %432 = vrot.lane.b32.xlu0 %v849_v12, %s679_s28 }
 0x124   :  { %v292_v21 = vsel %vm291_vm5, %v276_v58, %v278_v20  ;;  %v293_v36 = vsel %vm291_vm5, %v278_v20, %v280_v62 }
 0x125   :  { %v866_v24 = vadd.f32 %v292_v21, %v213_v19  ;;  %v896_v44 = vadd.f32 %v293_v36, %v214_v37 }
 0x127   :  { %v286_v28 = vpop.permute.xlu1 %285  ;;  %332 = vrot.lane.b32.xlu1 %v866_v24, %s678_s27  ;;  %518 = vrot.lane.b32.xlu0 %v845_v60, %s680_s29 }
 0x128   :  { %v295_v6 = vsel %vm291_vm5, %v284_v10, %v286_v28  ;;  %v296_v46 = vsel %vm291_vm5, %v286_v28, %v288_v39 }
 0x129   :  { %v898_v45 = vadd.f32 %v295_v6, %v217_v38  ;;  %v906_v50 = vadd.f32 %v296_v46, %v218_v49 }
 0x12b   :  { %v290_v40 = vpop.permute.xlu1 %289  ;;  %336 = vrot.lane.b32.xlu1 %v878_v31, %s678_s27  ;;  %526 = vrot.lane.b32.xlu0 %v849_v12, %s680_s29 }
 0x12c   :  { %v297_v47 = vsel %vm291_vm5, %v288_v39, %v290_v40 }
 0x12d   :  { %v908_v51 = vadd.f32 %v297_v47, %v219_v48 }
 0x12f   :  { %340 = vrot.lane.b32.xlu1 %v898_v45, %s678_s27  ;;  %334 = vrot.lane.b32.xlu0 %v896_v44, %s678_s27 }
 0x133   :  { %344 = vrot.lane.b32.xlu1 %v908_v51, %s678_s27  ;;  %342 = vrot.lane.b32.xlu0 %v906_v50, %s678_s27 }
 0x137   :  { %426 = vrot.lane.b32.xlu1 %v866_v24, %s679_s28  ;;  %428 = vrot.lane.b32.xlu0 %v896_v44, %s679_s28 }
 0x13b   :  { %430 = vrot.lane.b32.xlu1 %v878_v31, %s679_s28  ;;  %436 = vrot.lane.b32.xlu0 %v906_v50, %s679_s28 }
 0x13f   :  { %434 = vrot.lane.b32.xlu1 %v898_v45, %s679_s28  ;;  %522 = vrot.lane.b32.xlu0 %v896_v44, %s680_s29 }
 0x143   :  { %438 = vrot.lane.b32.xlu1 %v908_v51, %s679_s28  ;;  %530 = vrot.lane.b32.xlu0 %v906_v50, %s680_s29 }
 0x147   :  { %520 = vrot.lane.b32.xlu1 %v866_v24, %s680_s29 }
 0x14b   :  { %524 = vrot.lane.b32.xlu1 %v878_v31, %s680_s29 }
 0x14f   :  { %528 = vrot.lane.b32.xlu1 %v898_v45, %s680_s29 }
 0x153   :  { %532 = vrot.lane.b32.xlu1 %v908_v51, %s680_s29 }
 0x185   :  { %v331_v52 = vpop.permute.xlu0 %330 }
 0x18d   :  { %v339_v53 = vpop.permute.xlu0 %338 }
 0x191   :  { %v425_v54 = vpop.permute.xlu0 %424 }
 0x195   :  { %v433_v55 = vpop.permute.xlu0 %432 }
 0x199   :  { %v938_v56 = vpop.permute.xlu1 %332  ;;  %v519_v57 = vpop.permute.xlu0 %518 }
 0x19a   :  { %v347_v58 = vsel %vm346_vm6, %v331_v52, %v938_v56 }
 0x19b   :  { %v361_v59 = vadd.f32 %v347_v58, %v845_v60 }
 0x19d   :  { %v369_v61 = vmul.f32 0.036632847, %v361_v59  ;;  %v337_v62 = vpop.permute.xlu1 %336  ;;  %v943_v63 = vpop.permute.xlu0 %526 }
 0x19e   :  { %v364_v1 = vadd.f32 %v337_v62, %v878_v31 }
 0x19f   :  { %385 = vrot.lane.b32.xlu0 %v369_v61, %s681_s30 }
 0x1a0   :  { %v372_v9 = vmul.f32 0.036632847, %v364_v1 }
 0x1a1   :  { %v341_v10 = vpop.permute.xlu1 %340  ;;  %v335_v13 = vpop.permute.xlu0 %334 }
 0x1a2   :  { %v350_v5 = vsel %vm346_vm6, %v339_v53, %v341_v10  ;;  %v349_v14 = vsel %vm346_vm6, %v335_v13, %v337_v62  ;;  %391 = vrot.lane.b32.xlu1 %v372_v9, %s681_s30  ;;  %v348_v43 = vsel %vm346_vm6, %v938_v56, %v335_v13 }
 0x1a3   :  { %v363_v8 = vadd.f32 %v349_v14, %v896_v44  ;;  %v365_v11 = vadd.f32 %v350_v5, %v849_v12 }
 0x1a5   :  { %v371_v15 = vmul.f32 0.036632847, %v363_v8  ;;  %v345_v16 = vpop.permute.xlu1 %344  ;;  %v343_v18 = vpop.permute.xlu0 %342  ;;  %v373_v21 = vmul.f32 0.036632847, %v365_v11 }
 0x1a6   :  { %v368_v19 = vadd.f32 %v345_v16, %v908_v51  ;;  %v352_v20 = vsel %vm346_vm6, %v343_v18, %v345_v16 }
 0x1a7   :  { %389 = vrot.lane.b32.xlu0 %v371_v15, %s681_s30  ;;  %v367_v17 = vadd.f32 %v352_v20, %v906_v50 }
 0x1a8   :  { %v376_v3 = vmul.f32 0.036632847, %v368_v19 }
 0x1a9   :  { %v427_v22 = vpop.permute.xlu1 %426  ;;  %v375_v2 = vmul.f32 0.036632847, %v367_v17  ;;  %v429_v26 = vpop.permute.xlu0 %428 }
 0x1aa   :  { %v441_v23 = vsel %vm440_vm7, %v425_v54, %v427_v22  ;;  %399 = vrot.lane.b32.xlu1 %v376_v3, %s681_s30  ;;  %v362_v54 = vadd.f32 %v348_v43, %v866_v24  ;;  %v442_v9 = vsel %vm440_vm7, %v427_v22, %v429_v26 }
 0x1ab   :  { %393 = vrot.lane.b32.xlu0 %v373_v21, %s681_s30  ;;  %v455_v25 = vadd.f32 %v441_v23, %v845_v60  ;;  %v456_v11 = vadd.f32 %v442_v9, %v866_v24 }
 0x1ac   :  { %v370_v62 = vmul.f32 0.036632847, %v362_v54 }
 0x1ad   :  { %v431_v27 = vpop.permute.xlu1 %430  ;;  %v463_v29 = vmul.f32 0.11128076, %v455_v25  ;;  %v437_v35 = vpop.permute.xlu0 %436  ;;  %v464_v19 = vmul.f32 0.11128076, %v456_v11 }
 0x1ae   :  { %v443_v28 = vsel %vm440_vm7, %v429_v26, %v431_v27  ;;  %v458_v0 = vadd.f32 %v431_v27, %v878_v31 }
 0x1af   :  { %397 = vrot.lane.b32.xlu0 %v375_v2, %s681_s30  ;;  %v457_v30 = vadd.f32 %v443_v28, %v896_v44 }
 0x1b0   :  { %v466_v4 = vmul.f32 0.11128076, %v458_v0 }
 0x1b1   :  { %v435_v32 = vpop.permute.xlu1 %434  ;;  %v465_v34 = vmul.f32 0.11128076, %v457_v30  ;;  %v523_v46 = vpop.permute.xlu0 %522 }
 0x1b2   :  { %v444_v33 = vsel %vm440_vm7, %v433_v55, %v435_v32  ;;  %485 = vrot.lane.b32.xlu1 %v466_v4, %s682_s2  ;;  %v445_v15 = vsel %vm440_vm7, %v435_v32, %v437_v35 }
 0x1b3   :  { %479 = vrot.lane.b32.xlu0 %v463_v29, %s682_s2  ;;  %v459_v36 = vadd.f32 %v444_v33, %v849_v12  ;;  %v460_v20 = vadd.f32 %v445_v15, %v898_v45 }
 0x1b5   :  { %v439_v6 = vpop.permute.xlu1 %438  ;;  %v467_v40 = vmul.f32 0.11128076, %v459_v36  ;;  %v531_v13 = vpop.permute.xlu0 %530  ;;  %v468_v17 = vmul.f32 0.11128076, %v460_v20 }
 0x1b6   :  { %v446_v37 = vsel %vm440_vm7, %v437_v35, %v439_v6  ;;  %v462_v38 = vadd.f32 %v439_v6, %v908_v51 }
 0x1b7   :  { %483 = vrot.lane.b32.xlu0 %v465_v34, %s682_s2  ;;  %v461_v7 = vadd.f32 %v446_v37, %v906_v50  ;;  %v314_v37 = vmul.f32 0.27068216, %v845_v60 }
 0x1b8   :  { %v470_v39 = vmul.f32 0.11128076, %v462_v38 }
 0x1b9   :  { %v521_v41 = vpop.permute.xlu1 %520  ;;  %v469_v47 = vmul.f32 0.11128076, %v461_v7 }
 0x1ba   :  { %v535_v42 = vsel %vm534_vm8, %v519_v57, %v521_v41  ;;  %493 = vrot.lane.b32.xlu1 %v470_v39, %s682_s2  ;;  %v351_v57 = vsel %vm346_vm6, %v341_v10, %v343_v18  ;;  %v536_v3 = vsel %vm534_vm8, %v521_v41, %v523_v46 }
 0x1bb   :  { %487 = vrot.lane.b32.xlu0 %v467_v40, %s682_s2  ;;  %v549_v48 = vadd.f32 %v535_v42, %v845_v60  ;;  %v366_v1 = vadd.f32 %v351_v57, %v898_v45  ;;  %v550_v22 = vadd.f32 %v536_v3, %v866_v24 }
 0x1bd   :  { %v525_v49 = vpop.permute.xlu1 %524  ;;  %v557_v58 = vmul.f32 0.21674532, %v549_v48  ;;  %v558_v2 = vmul.f32 0.21674532, %v550_v22 }
 0x1be   :  { %v537_v52 = vsel %vm534_vm8, %v523_v46, %v525_v49  ;;  %v552_v53 = vadd.f32 %v525_v49, %v878_v31  ;;  %v318_v46 = vmul.f32 0.27068216, %v849_v12 }
 0x1bf   :  { %491 = vrot.lane.b32.xlu0 %v469_v47, %s682_s2  ;;  %v551_v59 = vadd.f32 %v537_v52, %v896_v44 }
 0x1c0   :  { %v560_v55 = vmul.f32 0.21674532, %v552_v53 }
 0x1c1   :  { %v529_v56 = vpop.permute.xlu1 %528  ;;  %v559_v5 = vmul.f32 0.21674532, %v551_v59  ;;  %v316_v59 = vmul.f32 0.27068216, %v896_v44 }
 0x1c2   :  { %v538_v61 = vsel %vm534_vm8, %v943_v63, %v529_v56  ;;  %579 = vrot.lane.b32.xlu1 %v560_v55, %s683_s3  ;;  %v374_v63 = vmul.f32 0.036632847, %v366_v1  ;;  %v539_v23 = vsel %vm534_vm8, %v529_v56, %v531_v13 }
 0x1c3   :  { %573 = vrot.lane.b32.xlu0 %v557_v58, %s683_s3  ;;  %v553_v10 = vadd.f32 %v538_v61, %v849_v12  ;;  %v554_v25 = vadd.f32 %v539_v23, %v898_v45  ;;  %v315_v12 = vmul.f32 0.27068216, %v866_v24 }
 0x1c5   :  { %v533_v14 = vpop.permute.xlu1 %532  ;;  %v561_v16 = vmul.f32 0.21674532, %v553_v10  ;;  %v562_v26 = vmul.f32 0.21674532, %v554_v25 }
 0x1c6   :  { %v540_v8 = vsel %vm534_vm8, %v531_v13, %v533_v14  ;;  %387 = vrot.lane.b32.xlu1 %v370_v62, %s681_s30  ;;  %v556_v27 = vadd.f32 %v533_v14, %v908_v51  ;;  %v317_v13 = vmul.f32 0.27068216, %v878_v31  ;;  %v320_v14 = vmul.f32 0.27068216, %v906_v50 }
 0x1c7   :  { %577 = vrot.lane.b32.xlu0 %v559_v5, %s683_s3  ;;  %v555_v18 = vadd.f32 %v540_v8, %v906_v50 }
 0x1c8   :  { %v564_v28 = vmul.f32 0.21674532, %v556_v27 }
 0x1c9   :  { %v563_v21 = vmul.f32 0.21674532, %v555_v18 }
 0x1ca   :  { %395 = vrot.lane.b32.xlu1 %v374_v63, %s681_s30 }
 0x1cb   :  { %581 = vrot.lane.b32.xlu0 %v561_v16, %s683_s3 }
 0x1ce   :  { %481 = vrot.lane.b32.xlu1 %v464_v19, %s682_s2 }
 0x1cf   :  { %585 = vrot.lane.b32.xlu0 %v563_v21, %s683_s3 }
 0x1d2   :  { %489 = vrot.lane.b32.xlu1 %v468_v17, %s682_s2  ;;  %v319_v17 = vmul.f32 0.27068216, %v898_v45 }
 0x1d6   :  { %575 = vrot.lane.b32.xlu1 %v558_v2, %s683_s3 }
 0x1da   :  { %583 = vrot.lane.b32.xlu1 %v562_v26, %s683_s3 }
 0x1de   :  { %587 = vrot.lane.b32.xlu1 %v564_v28, %s683_s3 }
 0x211   :  { %v386_v0 = vpop.permute.xlu0 %385 }
 0x212   :  { %v416_v40 = vadd.f32 %v386_v0, %v314_v37 }
 0x214   :  { %v392_v32 = vpop.permute.xlu1 %391 }
 0x219   :  { %v390_v4 = vpop.permute.xlu0 %389 }
 0x21a   :  { %v404_v5 = vsel %vm401_vm9, %v390_v4, %v392_v32 }
 0x21b   :  { %v419_v16 = vadd.f32 %v404_v5, %v317_v13 }
 0x21c   :  { %v1013_v34 = vpop.permute.xlu1 %399 }
 0x21d   :  { %v394_v29 = vpop.permute.xlu0 %393 }
 0x21e   :  { %v420_v49 = vadd.f32 %v394_v29, %v318_v46 }
 0x221   :  { %v1011_v30 = vpop.permute.xlu0 %397 }
 0x224   :  { %v486_v36 = vpop.permute.xlu1 %485 }
 0x225   :  { %v480_v33 = vpop.permute.xlu0 %479 }
 0x226   :  { %v510_v7 = vadd.f32 %v480_v33, %v416_v40 }
 0x229   :  { %v484_v35 = vpop.permute.xlu0 %483 }
 0x22a   :  { %v498_v63 = vsel %vm495_vm10, %v484_v35, %v486_v36 }
 0x22b   :  { %v513_v21 = vadd.f32 %v498_v63, %v419_v16 }
 0x22c   :  { %v1016_v38 = vpop.permute.xlu1 %493 }
 0x22d   :  { %v488_v6 = vpop.permute.xlu0 %487 }
 0x22e   :  { %v514_v52 = vadd.f32 %v488_v6, %v420_v49 }
 0x231   :  { %v1018_v39 = vpop.permute.xlu0 %491 }
 0x234   :  { %v580_v41 = vpop.permute.xlu1 %579 }
 0x235   :  { %v574_v42 = vpop.permute.xlu0 %573 }
 0x236   :  { %v604_v43 = vadd.f32 %v574_v42, %v510_v7 }
 0x238   :  { %v388_v47 = vpop.permute.xlu1 %387  ;;  %620 = vrot.lane.b32.xlu0 %v604_v43, %s684_s4 }
 0x239   :  { %v578_v48 = vpop.permute.xlu0 %577  ;;  %v402_v57 = vsel %vm401_vm9, %v386_v0, %v388_v47  ;;  %v403_v58 = vsel %vm401_vm9, %v388_v47, %v390_v4  ;;  %v407_v4 = vsel %vm401_vm9, %v1011_v30, %v1013_v34 }
 0x23a   :  { %v417_v1 = vadd.f32 %v402_v57, %v315_v12  ;;  %v418_v9 = vadd.f32 %v403_v58, %v316_v59  ;;  %v592_v3 = vsel %vm589_vm11, %v578_v48, %v580_v41 }
 0x23b   :  { %v607_v27 = vadd.f32 %v592_v3, %v513_v21 }
 0x23c   :  { %v396_v53 = vpop.permute.xlu1 %395 }
 0x23d   :  { %v582_v60 = vpop.permute.xlu0 %581  ;;  %v406_v10 = vsel %vm401_vm9, %v396_v53, %v1011_v30  ;;  %v405_v50 = vsel %vm401_vm9, %v394_v29, %v396_v53  ;;  %v321_v29 = vmul.f32 0.27068216, %v908_v51 }
 0x23e   :  { %v608_v54 = vadd.f32 %v582_v60, %v514_v52  ;;  %v422_v18 = vadd.f32 %v406_v10, %v320_v14  ;;  %v421_v28 = vadd.f32 %v405_v50, %v319_v17 }
 0x23f   :  { %v423_v36 = vadd.f32 %v407_v4, %v321_v29 }
 0x240   :  { %v482_v55 = vpop.permute.xlu1 %481  ;;  %628 = vrot.lane.b32.xlu0 %v608_v54, %s684_s4 }
 0x241   :  { %v496_v61 = vsel %vm495_vm10, %v480_v33, %v482_v55  ;;  %v497_v62 = vsel %vm495_vm10, %v482_v55, %v484_v35  ;;  %v586_v22 = vpop.permute.xlu0 %585  ;;  %v501_v35 = vsel %vm495_vm10, %v1018_v39, %v1016_v38 }
 0x242   :  { %v511_v24 = vadd.f32 %v496_v61, %v417_v1  ;;  %v512_v8 = vadd.f32 %v497_v62, %v418_v9  ;;  %v517_v40 = vadd.f32 %v501_v35, %v423_v36 }
 0x244   :  { %v490_v56 = vpop.permute.xlu1 %489 }
 0x245   :  { %v500_v11 = vsel %vm495_vm10, %v490_v56, %v1018_v39  ;;  %v499_v25 = vsel %vm495_vm10, %v488_v6, %v490_v56 }
 0x246   :  { %v516_v23 = vadd.f32 %v500_v11, %v422_v18  ;;  %v515_v32 = vadd.f32 %v499_v25, %v421_v28 }
 0x248   :  { %v576_v44 = vpop.permute.xlu1 %575 }
 0x249   :  { %v590_v15 = vsel %vm589_vm11, %v574_v42, %v576_v44  ;;  %v591_v31 = vsel %vm589_vm11, %v576_v44, %v578_v48 }
 0x24a   :  { %v605_v19 = vadd.f32 %v590_v15, %v511_v24  ;;  %v606_v20 = vadd.f32 %v591_v31, %v512_v8 }
 0x24c   :  { %v584_v2 = vpop.permute.xlu1 %583  ;;  %622 = vrot.lane.b32.xlu1 %v605_v19, %s684_s4  ;;  %624 = vrot.lane.b32.xlu0 %v606_v20, %s684_s4 }
 0x24d   :  { %v594_v26 = vsel %vm589_vm11, %v584_v2, %v586_v22  ;;  %v593_v45 = vsel %vm589_vm11, %v582_v60, %v584_v2 }
 0x24e   :  { %v610_v0 = vadd.f32 %v594_v26, %v516_v23  ;;  %v609_v6 = vadd.f32 %v593_v45, %v515_v32 }
 0x250   :  { %v588_v33 = vpop.permute.xlu1 %587  ;;  %626 = vrot.lane.b32.xlu1 %v607_v27, %s684_s4  ;;  %632 = vrot.lane.b32.xlu0 %v610_v0, %s684_s4 }
 0x251   :  { %v595_v37 = vsel %vm589_vm11, %v586_v22, %v588_v33 }
 0x252   :  { %v611_v30 = vadd.f32 %v595_v37, %v517_v40 }
 0x254   :  { %630 = vrot.lane.b32.xlu1 %v609_v6, %s684_s4 }
 0x258   :  { %634 = vrot.lane.b32.xlu1 %v611_v30, %s684_s4 }
 0x2aa   :  { %v621_v51 = vpop.permute.xlu0 %620 }
 0x2b2   :  { %v629_v34 = vpop.permute.xlu0 %628 }
 0x2be   :  { %v623_v7 = vpop.permute.xlu1 %622  ;;  %v625_v41 = vpop.permute.xlu0 %624 }
 0x2bf   :  { %v637_v42 = vsel %vm636_vm12, %v621_v51, %v623_v7  ;;  %v638_v43 = vsel %vm636_vm12, %v623_v7, %v625_v41 }
 0x2c0   :  { %649 = vst [vmem:[%s1084_s1] sm:$0xff] %v637_v42  ;;  %650 = vst [vmem:[%s1084_s1 + $0x8] sm:$0xff] %v638_v43 }
 0x2c2   :  { %v627_v38 = vpop.permute.xlu1 %626  ;;  %v633_v46 = vpop.permute.xlu0 %632 }
 0x2c3   :  { %v639_v39 = vsel %vm636_vm12, %v625_v41, %v627_v38 }
 0x2c4   :  { %651 = vst [vmem:[%s1084_s1 + $0x10] sm:$0xff] %v639_v39 }
 0x2c6   :  { %v631_v47 = vpop.permute.xlu1 %630 }
 0x2c7   :  { %v640_v48 = vsel %vm636_vm12, %v629_v34, %v631_v47  ;;  %v641_v49 = vsel %vm636_vm12, %v631_v47, %v633_v46 }
 0x2c8   :  { %652 = vst [vmem:[%s1084_s1 + $0x18] sm:$0xf] %v640_v48  ;;  %653 = vst [vmem:[%s1084_s1 + $0x20] sm:$0xf] %v641_v49 }
 0x2ca   :  { %v635_v52 = vpop.permute.xlu1 %634 }
 0x2cb   :  { %v642_v53 = vsel %vm636_vm12, %v633_v46, %v635_v52 }
 0x2cc   :  { %654 = vst [vmem:[%s1084_s1 + $0x28] sm:$0xf] %v642_v53 }

// kernel: aligned_l1.3
= control target key start
LH: loop header
LB: loop body
LE: loop exit
PB: predicated region body
PF: predicated region fallthrough
CT: control target
= control target key end

     0   :  { %s1582_s0 = inlined_call_operand.vmem [shape: f32[2,9], index: 0, kind: input, shape index: {}]   ;;  %s1583_s1 = inlined_call_operand.vmem [shape: f32[2,3,128,128], index: 1, kind: input, shape index: {}]   ;;  %s1584_s2 = inlined_call_operand.vmem [shape: f32[2,3,128,128], index: 2, kind: input, shape index: {}]   ;;  %s1585_s3 = inlined_call_operand.vmem [shape: f32[2,128,128], index: 3, kind: input, shape index: {}]   ;;  %s1586_s4 = inlined_call_operand.vmem [shape: f32[2,64,128], index: 4, kind: output, shape index: {}]  }
   0x1   :  { %s9_s17 = sshll.u32 %s1582_s0, 4  ;;  %s10_s17 = int_to_ptr.vmem [resolvable:$true] %s9_s17 }
   0x2   :  { %s1077_s18 = scalar_lea.vmem %s10_s17, 32  ;;  %p1082_p1 = scmp.lt.s32.totalorder %s10_s17, %s10_s17 }
   0x3   :  { %p1078_p0 = scmp.ne.s32.totalorder %s10_s17, %s1077_s18  ;;  %p1083_p2 = scmp.lt.s32.totalorder %s1077_s18, %s1077_s18 }
   0x5   :  { %p1084_p3 = por %p1083_p2, %p1082_p1 }
   0x7   :  { %p1085_p4 = pnand %p1084_p3, %p1078_p0 }
   0x9   :  { %1088 = shalt.err (!%p1085_p4)  }
   0xa   :  { %s1147_s19 = smov [#allocation3]  }
   0xb   :  { %12 = dma.vmem_to_smem %s10_s17, 32, %s1147_s19, [#allocation2] }
   0xc   :  { %1117 = dma.done.wait [#allocation2], 32 }
   0xd   :  { %1118 = vsyncadd [#allocation2], 4294967264 }
   0xe   :  { %14 = sfence }
   0xf   :  { %s1177_s20 = smov 0   ;;  %s1179_s21 = smov 0  }
  0x10   :  { %s1181_s22 = smov 0   ;;  %s1183_s0 = smov 0  }
  0x11   :  { %s1185_s23 = smov 0   ;;  %s1187_s24 = smov 0  }
  0x12   :  { %s1189_s25 = smov 0  }
  0x13 LB: > { %s29_s26 = sadd.s32 1, %s1137_s23  ;;  %s32_s27 = sadd.s32 1, %s1141_s24  ;;  %s1145_s25 = sphi %s1189_s25, %s20_s25   ;;  %s1141_s24 = sphi %s1187_s24, %s1593_s24   ;;  %s1137_s23 = sphi %s1185_s23, %s1592_s23   ;;  %s1133_s0 = sphi %s1183_s0, %s1591_s0   ;;  %s1129_s22 = sphi %s1181_s22, %s1590_s22   ;;  %s1125_s21 = sphi %s1179_s21, %s1589_s21   ;;  %s1121_s20 = sphi %s1177_s20, %s1588_s20  }
  0x14   : > { %p30_p5 = scmp.ge.s32.totalorder %s29_s26, 2  ;;  %p48_p6 = scmp.ne.s32.totalorder %s1125_s21, %s1121_s20 }
  0x15   : > { %p49_p7 = scmp.eq.s32.totalorder %s1145_s25, 0  ;;  %s41_s6 = sadd.s32 1, %s1125_s21 }
  0x16   : > { %s1595_s26 = smov (%p30_p5, %s29_s26), 0  ;;  %s1597_s27 = smov (!%p30_p5, %s32_s27), %s1141_s24 }
  0x17   : > { %p1220_p8 = por %p49_p7, %p48_p6  ;;  %p34_p9 = scmp.ge.s32.totalorder %s1597_s27, 2 }
  0x18   : > { %s37_s29 = ssub.s32 %s1137_s23, %s1595_s26  ;;  %p966_p11 = scmp.ge.s32.totalorder %s1145_s25, 4 }
  0x19   : > { %s1599_s27 = smov (%p34_p9, %s1597_s27), 0 }
  0x1a   : > { %s36_s30 = ssub.s32 %s1141_s24, %s1599_s27  ;;  %156 = sbr.rel (%p966_p11) target bundleno = 73 (0x49), region = 16 }
  0x1b   : > { %s38_s5 = sor.u32 %s37_s29, %s36_s30 }
  0x1c   : > { %p39_p10 = scmp.eq.s32.totalorder %s38_s5, 0 }
  0x1e   : > { %s1232_s7 = scalar_select %p39_p10, %s1125_s21, %s41_s6  }
  0x21   : > { %159 = sbr.rel (!%p1220_p8) target bundleno = 53 (0x35), region = 20  ;;  %s161_s8 = sand.u32 (%p1220_p8), 1, %s1125_s21  }
  0x22   : > { %s1014_s9 = smul.u32 (%p1220_p8), 192, %s161_s8  ;;  %s967_s10 = sshll.u32 (%p1220_p8), %s1137_s23, 3 }
  0x23   : > { %s1015_s11 = smul.u32 (%p1220_p8), 48, %s1141_s24 }
  0x24   : > { %s1248_s17 = scalar_lea.vmem (%p1220_p8), [#allocation4], %s1014_s9 }
  0x25   : > { %s166_s12 = sadd.s32 (%p1220_p8), %s1015_s11, %s967_s10 }
  0x26   : > { %s968_s13 = sshll.u32 (%p1220_p8), %s166_s12, 3 }
  0x27   : > { %s1243_s16 = scalar_lea.vmem (%p1220_p8), %s1583_s1, %s968_s13 }
  0x28   : > { %v242_v0 = vld [vmem:[%s1243_s16] sm:$0xff]  ;;  %v244_v1 = vld [vmem:[%s1243_s16 + $0x8] sm:$0xff]  ;;  %v246_v2 = vld [vmem:[%s1243_s16 + $0x10] sm:$0xff] }
  0x29   : > { %243 = vst [vmem:[%s1248_s17] sm:$0xff] %v242_v0  ;;  %245 = vst [vmem:[%s1248_s17 + $0x8] sm:$0xff] %v244_v1  ;;  %v248_v3 = vld [vmem:[%s1243_s16 + $0x18] sm:$0xff]  ;;  %v250_v4 = vld [vmem:[%s1243_s16 + $0x20] sm:$0xff] }
  0x2a   : > { %247 = vst [vmem:[%s1248_s17 + $0x10] sm:$0xff] %v246_v2  ;;  %v252_v5 = vld [vmem:[%s1243_s16 + $0x28] sm:$0xff]  ;;  %249 = vst [vmem:[%s1248_s17 + $0x18] sm:$0xff] %v248_v3  ;;  %v254_v6 = vld [vmem:[%s1243_s16 + $0x30] sm:$0xff] }
  0x2b   : > { %251 = vst [vmem:[%s1248_s17 + $0x20] sm:$0xff] %v250_v4  ;;  %253 = vst [vmem:[%s1248_s17 + $0x28] sm:$0xff] %v252_v5  ;;  %v256_v7 = vld [vmem:[%s1243_s16 + $0x38] sm:$0xff]  ;;  %v258_v8 = vld [vmem:[%s1243_s16 + $0x80] sm:$0xff] }
  0x2c   : > { %255 = vst [vmem:[%s1248_s17 + $0x30] sm:$0xff] %v254_v6  ;;  %257 = vst [vmem:[%s1248_s17 + $0x38] sm:$0xff] %v256_v7  ;;  %v260_v9 = vld [vmem:[%s1243_s16 + $0x88] sm:$0xff]  ;;  %v262_v10 = vld [vmem:[%s1243_s16 + $0x90] sm:$0xff] }
  0x2d   : > { %259 = vst [vmem:[%s1248_s17 + $0x40] sm:$0xff] %v258_v8  ;;  %v264_v11 = vld [vmem:[%s1243_s16 + $0x98] sm:$0xff]  ;;  %261 = vst [vmem:[%s1248_s17 + $0x48] sm:$0xff] %v260_v9  ;;  %v266_v12 = vld [vmem:[%s1243_s16 + $0xa0] sm:$0xff] }
  0x2e   : > { %263 = vst [vmem:[%s1248_s17 + $0x50] sm:$0xff] %v262_v10  ;;  %265 = vst [vmem:[%s1248_s17 + $0x58] sm:$0xff] %v264_v11  ;;  %v268_v13 = vld [vmem:[%s1243_s16 + $0xa8] sm:$0xff]  ;;  %v270_v14 = vld [vmem:[%s1243_s16 + $0xb0] sm:$0xff] }
  0x2f   : > { %267 = vst [vmem:[%s1248_s17 + $0x60] sm:$0xff] %v266_v12  ;;  %269 = vst [vmem:[%s1248_s17 + $0x68] sm:$0xff] %v268_v13  ;;  %v272_v15 = vld [vmem:[%s1243_s16 + $0xb8] sm:$0xff]  ;;  %v274_v16 = vld [vmem:[%s1243_s16 + $0x100] sm:$0xff] }
  0x30   : > { %271 = vst [vmem:[%s1248_s17 + $0x70] sm:$0xff] %v270_v14  ;;  %v276_v17 = vld [vmem:[%s1243_s16 + $0x108] sm:$0xff]  ;;  %273 = vst [vmem:[%s1248_s17 + $0x78] sm:$0xff] %v272_v15  ;;  %v278_v18 = vld [vmem:[%s1243_s16 + $0x110] sm:$0xff] }
  0x31   : > { %275 = vst [vmem:[%s1248_s17 + $0x80] sm:$0xff] %v274_v16  ;;  %277 = vst [vmem:[%s1248_s17 + $0x88] sm:$0xff] %v276_v17  ;;  %v280_v19 = vld [vmem:[%s1243_s16 + $0x118] sm:$0xff]  ;;  %v282_v20 = vld [vmem:[%s1243_s16 + $0x120] sm:$0xff] }
  0x32   : > { %279 = vst [vmem:[%s1248_s17 + $0x90] sm:$0xff] %v278_v18  ;;  %281 = vst [vmem:[%s1248_s17 + $0x98] sm:$0xff] %v280_v19  ;;  %v284_v21 = vld [vmem:[%s1243_s16 + $0x128] sm:$0xff]  ;;  %v286_v22 = vld [vmem:[%s1243_s16 + $0x130] sm:$0xff] }
  0x33   : > { %283 = vst [vmem:[%s1248_s17 + $0xa0] sm:$0xff] %v282_v20  ;;  %v288_v23 = vld [vmem:[%s1243_s16 + $0x138] sm:$0xff]  ;;  %285 = vst [vmem:[%s1248_s17 + $0xa8] sm:$0xff] %v284_v21 }
  0x34   : > { %287 = vst [vmem:[%s1248_s17 + $0xb0] sm:$0xff] %v286_v22  ;;  %289 = vst [vmem:[%s1248_s17 + $0xb8] sm:$0xff] %v288_v23 }
  0x35 PF: > { %295 = sbr.rel (!%p1220_p8) target bundleno = 73 (0x49), region = 58  ;;  %s297_s18 = sand.u32 (%p1220_p8), 1, %s1125_s21  }
  0x36   : > { %s1016_s19 = smul.u32 (%p1220_p8), 192, %s297_s18  ;;  %s969_s29 = sshll.u32 (%p1220_p8), %s1137_s23, 3 }
  0x37   : > { %s1017_s30 = smul.u32 (%p1220_p8), 48, %s1141_s24 }
  0x38   : > { %s1308_s28 = scalar_lea.vmem (%p1220_p8), [#allocation5], %s1016_s19 }
  0x39   : > { %s302_s5 = sadd.s32 (%p1220_p8), %s1017_s30, %s969_s29 }
  0x3a   : > { %s970_s6 = sshll.u32 (%p1220_p8), %s302_s5, 3 }
  0x3b   : > { %s1303_s10 = scalar_lea.vmem (%p1220_p8), %s1584_s2, %s970_s6 }
  0x3c   : > { %v378_v24 = vld [vmem:[%s1303_s10] sm:$0xff]  ;;  %v380_v25 = vld [vmem:[%s1303_s10 + $0x8] sm:$0xff]  ;;  %v382_v26 = vld [vmem:[%s1303_s10 + $0x10] sm:$0xff] }
  0x3d   : > { %379 = vst [vmem:[%s1308_s28] sm:$0xff] %v378_v24  ;;  %381 = vst [vmem:[%s1308_s28 + $0x8] sm:$0xff] %v380_v25  ;;  %v384_v27 = vld [vmem:[%s1303_s10 + $0x18] sm:$0xff]  ;;  %v386_v28 = vld [vmem:[%s1303_s10 + $0x20] sm:$0xff] }
  0x3e   : > { %383 = vst [vmem:[%s1308_s28 + $0x10] sm:$0xff] %v382_v26  ;;  %v388_v29 = vld [vmem:[%s1303_s10 + $0x28] sm:$0xff]  ;;  %385 = vst [vmem:[%s1308_s28 + $0x18] sm:$0xff] %v384_v27  ;;  %v390_v30 = vld [vmem:[%s1303_s10 + $0x30] sm:$0xff] }
  0x3f   : > { %387 = vst [vmem:[%s1308_s28 + $0x20] sm:$0xff] %v386_v28  ;;  %389 = vst [vmem:[%s1308_s28 + $0x28] sm:$0xff] %v388_v29  ;;  %v392_v31 = vld [vmem:[%s1303_s10 + $0x38] sm:$0xff]  ;;  %v394_v32 = vld [vmem:[%s1303_s10 + $0x80] sm:$0xff] }
  0x40   : > { %391 = vst [vmem:[%s1308_s28 + $0x30] sm:$0xff] %v390_v30  ;;  %393 = vst [vmem:[%s1308_s28 + $0x38] sm:$0xff] %v392_v31  ;;  %v396_v33 = vld [vmem:[%s1303_s10 + $0x88] sm:$0xff]  ;;  %v398_v34 = vld [vmem:[%s1303_s10 + $0x90] sm:$0xff] }
  0x41   : > { %395 = vst [vmem:[%s1308_s28 + $0x40] sm:$0xff] %v394_v32  ;;  %v400_v35 = vld [vmem:[%s1303_s10 + $0x98] sm:$0xff]  ;;  %397 = vst [vmem:[%s1308_s28 + $0x48] sm:$0xff] %v396_v33  ;;  %v402_v36 = vld [vmem:[%s1303_s10 + $0xa0] sm:$0xff] }
  0x42   : > { %399 = vst [vmem:[%s1308_s28 + $0x50] sm:$0xff] %v398_v34  ;;  %401 = vst [vmem:[%s1308_s28 + $0x58] sm:$0xff] %v400_v35  ;;  %v404_v37 = vld [vmem:[%s1303_s10 + $0xa8] sm:$0xff]  ;;  %v406_v38 = vld [vmem:[%s1303_s10 + $0xb0] sm:$0xff] }
  0x43   : > { %403 = vst [vmem:[%s1308_s28 + $0x60] sm:$0xff] %v402_v36  ;;  %405 = vst [vmem:[%s1308_s28 + $0x68] sm:$0xff] %v404_v37  ;;  %v408_v39 = vld [vmem:[%s1303_s10 + $0xb8] sm:$0xff]  ;;  %v410_v40 = vld [vmem:[%s1303_s10 + $0x100] sm:$0xff] }
  0x44   : > { %407 = vst [vmem:[%s1308_s28 + $0x70] sm:$0xff] %v406_v38  ;;  %v412_v41 = vld [vmem:[%s1303_s10 + $0x108] sm:$0xff]  ;;  %409 = vst [vmem:[%s1308_s28 + $0x78] sm:$0xff] %v408_v39  ;;  %v414_v42 = vld [vmem:[%s1303_s10 + $0x110] sm:$0xff] }
  0x45   : > { %411 = vst [vmem:[%s1308_s28 + $0x80] sm:$0xff] %v410_v40  ;;  %413 = vst [vmem:[%s1308_s28 + $0x88] sm:$0xff] %v412_v41  ;;  %v416_v43 = vld [vmem:[%s1303_s10 + $0x118] sm:$0xff]  ;;  %v418_v44 = vld [vmem:[%s1303_s10 + $0x120] sm:$0xff] }
  0x46   : > { %415 = vst [vmem:[%s1308_s28 + $0x90] sm:$0xff] %v414_v42  ;;  %417 = vst [vmem:[%s1308_s28 + $0x98] sm:$0xff] %v416_v43  ;;  %v420_v45 = vld [vmem:[%s1303_s10 + $0x128] sm:$0xff]  ;;  %v422_v46 = vld [vmem:[%s1303_s10 + $0x130] sm:$0xff] }
  0x47   : > { %419 = vst [vmem:[%s1308_s28 + $0xa0] sm:$0xff] %v418_v44  ;;  %v424_v47 = vld [vmem:[%s1303_s10 + $0x138] sm:$0xff]  ;;  %421 = vst [vmem:[%s1308_s28 + $0xa8] sm:$0xff] %v420_v45 }
  0x48   : > { %423 = vst [vmem:[%s1308_s28 + $0xb0] sm:$0xff] %v422_v46  ;;  %425 = vst [vmem:[%s1308_s28 + $0xb8] sm:$0xff] %v424_v47 }
  0x49 PF: > { %p971_p12 = scmp.ge.s32.totalorder %s1145_s25, 1  ;;  %p443_p13 = scmp.lt.s32.totalorder %s1145_s25, 5 }
  0x4b   : > { %p444_p0 = pnand %p971_p12, %p443_p13 }
  0x4c   : > { %s450_s11 = sand.u32 (!%p444_p0), 1, %s1121_s20   ;;  %s972_s12 = sshll.u32 (!%p444_p0), %s1129_s22, 3 }
  0x4d   : > { %447 = sbr.rel (%p444_p0) target bundleno = 170 (0xaa), region = 100  ;;  %p496_p1 = scmp.lt.s32.totalorder (!%p444_p0), %s1133_s0, 1 }
  0x4e   : > { %s1018_s13 = smul.u32 (!%p444_p0), 192, %s450_s11  ;;  %p498_p2 = scmp.lt.s32.totalorder (!%p444_p0), %s972_s12, 15 }
  0x4f   : > { %p977_p3 = scmp.ne.s32.totalorder (!%p444_p0), %s1129_s22, 0 }
  0x50   : > { %s1371_s20 = scalar_lea.vmem (!%p444_p0), [#allocation4], %s1018_s13  ;;  %s1373_s9 = scalar_lea.vmem (!%p444_p0), [#allocation5], %s1018_s13 }
  0x54   : > { %s497_s14 = scalar_select %p496_p1, %s1133_s0, 1 }
  0x55   : > { %s1601_s12 = smov (!%p498_p2, %s972_s12), 15  ;;  %513 = sbr.rel (%p977_p3) target bundleno = 92 (0x5c), region = 112 }
  0x56   : > { %s973_s15 = sshll.u32 %s497_s14, 4  ;;  %s1013_s16 = sshll.u32 %s497_s14, 6  ;;  %v1148_v48 = vmov (!%p977_p3), 0.0  }
  0x57   : > { %s501_s17 = sadd.s32 %s973_s15, %s1601_s12  ;;  %s1364_s29 = scalar_lea.vmem %s1586_s4, %s1013_s16 }
  0x58   : > { %s974_s30 = sshll.u32 %s501_s17, 3  ;;  %514 = vst [vmem:[%s1364_s29] sm:$0xff] (!%p977_p3), %v1148_v48  ;;  %515 = vst [vmem:[%s1364_s29 + $0x8] sm:$0xff] (!%p977_p3), %v1148_v48 }
  0x59   : > { %s1369_s8 = scalar_lea.vmem %s1585_s3, %s974_s30  ;;  %516 = vst [vmem:[%s1364_s29 + $0x10] sm:$0xff] (!%p977_p3), %v1148_v48  ;;  %517 = vst [vmem:[%s1364_s29 + $0x18] sm:$0xff] (!%p977_p3), %v1148_v48 }
  0x5a   : > { %518 = vst [vmem:[%s1364_s29 + $0x20] sm:$0xff] (!%p977_p3), %v1148_v48  ;;  %519 = vst [vmem:[%s1364_s29 + $0x28] sm:$0xff] (!%p977_p3), %v1148_v48 }
  0x5b   : > { %520 = vst [vmem:[%s1364_s29 + $0x30] sm:$0xff] (!%p977_p3), %v1148_v48  ;;  %521 = vst [vmem:[%s1364_s29 + $0x38] sm:$0xff] (!%p977_p3), %v1148_v48 }
  0x5c PF: > { %s978_s22 = sshll.u32 %s1133_s0, 7  ;;  %v540_v49 = vld [vmem:[%s1371_s20] sm:$0xff]  ;;  %v541_v50 = vld [vmem:[%s1371_s20 + $0x8] sm:$0xff]  ;;  %v542_v51 = vld [vmem:[%s1371_s20 + $0x10] sm:$0xff] }
  0x5d   : > { %s523_s10 = sld [smem:[#allocation3 + %s978_s22]]  ;;  %s524_s28 = sadd.s32 1, %s978_s22  ;;  %v979_v53 = vld [vmem:[%s1371_s20 + $0x40] sm:$0xff]  ;;  %v980_v56 = vld [vmem:[%s1371_s20 + $0x48] sm:$0xff]  ;;  %v1401_v58 = vld [vmem:[%s1371_s20 + $0x50] sm:$0xff] }
  0x5e   : > { %s525_s11 = sld [smem:[#allocation3 + %s524_s28]]  ;;  %s526_s12 = sadd.s32 2, %s978_s22  ;;  %v987_v4 = vld [vmem:[%s1371_s20 + $0x80] sm:$0xff]  ;;  %v988_v7 = vld [vmem:[%s1371_s20 + $0x88] sm:$0xff]  ;;  %v989_v33 = vld [vmem:[%s1371_s20 + $0x90] sm:$0xff] }
  0x5f   : > { %s527_s13 = sld [smem:[#allocation3 + %s526_s12]]  ;;  %s528_s14 = sadd.s32 3, %s978_s22  ;;  %v609_v22 = vld [vmem:[%s1373_s9] sm:$0xff]  ;;  %v610_v26 = vld [vmem:[%s1373_s9 + $0x8] sm:$0xff] }
  0x60   : > { %s529_s15 = sld [smem:[#allocation3 + %s528_s14]]  ;;  %s530_s16 = sadd.s32 4, %s978_s22  ;;  %v995_v29 = vld [vmem:[%s1373_s9 + $0x40] sm:$0xff]  ;;  %v996_v36 = vld [vmem:[%s1373_s9 + $0x48] sm:$0xff] }
  0x61   : > { %s531_s17 = sld [smem:[#allocation3 + %s530_s16]]  ;;  %s532_s18 = sadd.s32 5, %s978_s22  ;;  %v1003_v35 = vld [vmem:[%s1373_s9 + $0x80] sm:$0xff] }
  0x62   : > { %s533_s19 = sld [smem:[#allocation3 + %s532_s18]]  ;;  %s534_s30 = sadd.s32 6, %s978_s22 }
  0x63   : > { %s1388_s5 = sld [smem:[#allocation3 + %s534_s30]]  ;;  %s536_s0 = sadd.s32 7, %s978_s22  ;;  %v1390_v52 = vstv %s523_s10 }
  0x64   : > { %s1392_s6 = sld [smem:[#allocation3 + %s536_s0]]  ;;  %s538_s28 = sadd.s32 8, %s978_s22  ;;  %v567_v54 = vmul.f32 %v1390_v52, %v540_v49  ;;  %v1396_v55 = vstv %s525_s11  ;;  %v568_v57 = vmul.f32 %v1390_v52, %v541_v50  ;;  %v569_v59 = vmul.f32 %v1390_v52, %v542_v51 }
  0x65   : > { %s539_s12 = sld [smem:[#allocation3 + %s538_s28]]  ;;  %v642_v60 = vmul.f32 %v1396_v55, %v540_v49  ;;  %v1405_v61 = vstv %s527_s13  ;;  %v643_v62 = vmul.f32 %v1396_v55, %v541_v50  ;;  %v644_v63 = vmul.f32 %v1396_v55, %v542_v51 }
  0x66   : > { %v1409_v0 = vstv %s529_s15  ;;  %v726_v1 = vmul.f32 %v1405_v61, %v540_v49  ;;  %v727_v2 = vmul.f32 %v1405_v61, %v541_v50  ;;  %v1414_v3 = vmul.f32 %v1405_v61, %v542_v51 }
  0x67   : > { %v576_v5 = vmul.f32 %v979_v53, %v1409_v0  ;;  %v1418_v6 = vstv %s531_s17  ;;  %v577_v8 = vmul.f32 %v980_v56, %v1409_v0  ;;  %v578_v9 = vmul.f32 %v1401_v58, %v1409_v0 }
  0x68   : > { %v651_v10 = vmul.f32 %v979_v53, %v1418_v6  ;;  %v1425_v11 = vstv %s533_s19  ;;  %v652_v12 = vmul.f32 %v980_v56, %v1418_v6  ;;  %v653_v13 = vmul.f32 %v1401_v58, %v1418_v6 }
  0x69   : > { %v584_v14 = vadd.f32 %v576_v5, %v567_v54  ;;  %v1431_v15 = vstv %s1388_s5  ;;  %v735_v16 = vmul.f32 %v979_v53, %v1425_v11  ;;  %v585_v17 = vadd.f32 %v577_v8, %v568_v57  ;;  %v1004_v53 = vld [vmem:[%s1373_s9 + $0x88] sm:$0xff]  ;;  %v611_v54 = vld [vmem:[%s1373_s9 + $0x10] sm:$0xff] }
  0x6a   : > { %v593_v18 = vmul.f32 %v987_v4, %v1431_v15  ;;  %v659_v19 = vadd.f32 %v651_v10, %v642_v60  ;;  %v1436_v20 = vstv %s1392_s6  ;;  %v594_v21 = vmul.f32 %v988_v7, %v1431_v15  ;;  %v543_v10 = vld [vmem:[%s1371_s20 + $0x18] sm:$0xff] }
  0x6b   : > { %v668_v23 = vmul.f32 %v987_v4, %v1436_v20  ;;  %v743_v24 = vadd.f32 %v735_v16, %v726_v1  ;;  %v1441_v25 = vstv %s539_s12  ;;  %v660_v27 = vadd.f32 %v652_v12, %v643_v62  ;;  %v997_v62 = vld [vmem:[%s1373_s9 + $0x50] sm:$0xff]  ;;  %v982_v12 = vld [vmem:[%s1371_s20 + $0x58] sm:$0xff] }
  0x6c   : > { %v601_v28 = vadd.f32 %v593_v18, %v584_v14  ;;  %v752_v30 = vmul.f32 %v987_v4, %v1441_v25  ;;  %v602_v31 = vadd.f32 %v594_v21, %v585_v17  ;;  %v669_v32 = vmul.f32 %v988_v7, %v1436_v20  ;;  %v1005_v18 = vld [vmem:[%s1373_s9 + $0x90] sm:$0xff] }
  0x6d   : > { %v676_v34 = vadd.f32 %v668_v23, %v659_v19  ;;  %v736_v37 = vmul.f32 %v980_v56, %v1425_v11  ;;  %v753_v38 = vmul.f32 %v988_v7, %v1441_v25  ;;  %v586_v39 = vadd.f32 %v578_v9, %v569_v59  ;;  %v990_v19 = vld [vmem:[%s1371_s20 + $0x98] sm:$0xff] }
  0x6e   : > { %v617_v40 = vsub.f32 %v601_v28, %v609_v22  ;;  %v760_v41 = vadd.f32 %v752_v30, %v743_v24  ;;  %v618_v42 = vsub.f32 %v602_v31, %v610_v26  ;;  %v677_v43 = vadd.f32 %v669_v32, %v660_v27  ;;  %v817_v24 = vld [vmem:[%s1369_s8] sm:$0xff] }
  0x6f   : > { %v693_v44 = vsub.f32 %v676_v34, %v995_v29  ;;  %v744_v45 = vadd.f32 %v736_v37, %v727_v2  ;;  %v595_v46 = vmul.f32 %v989_v33, %v1431_v15  ;;  %v661_v47 = vadd.f32 %v653_v13, %v644_v63  ;;  %v818_v34 = vld [vmem:[%s1369_s8 + $0x8] sm:$0xff] }
  0x70   : > { %v625_v48 = vand.u32 2147483647, %v617_v40  ;;  %v777_v49 = vsub.f32 %v760_v41, %v1003_v35  ;;  %v626_v50 = vand.u32 2147483647, %v618_v42  ;;  %v694_v51 = vsub.f32 %v677_v43, %v996_v36  ;;  %v612_v41 = vld [vmem:[%s1373_s9 + $0x18] sm:$0xff] }
  0x71   : > { %v701_v56 = vand.u32 2147483647, %v693_v44  ;;  %v761_v57 = vadd.f32 %v753_v38, %v744_v45  ;;  %v603_v59 = vadd.f32 %v595_v46, %v586_v39  ;;  %v670_v60 = vmul.f32 %v989_v33, %v1436_v20  ;;  %v810_v44 = vld [vmem:[%s1364_s29 + $0x8] sm:$0xff] }
  0x72   : > { %v633_v1 = vadd.f32 1e-12, %v625_v48  ;;  %v785_v2 = vand.u32 2147483647, %v777_v49  ;;  %v634_v4 = vadd.f32 1e-12, %v626_v50  ;;  %v737_v63 = vmul.f32 %v1401_v58, %v1425_v11 }
  0x73   : > { %v709_v5 = vadd.f32 1e-12, %v701_v56  ;;  %v702_v7 = vand.u32 2147483647, %v694_v51  ;;  %v778_v8 = vsub.f32 %v761_v57, %v1004_v53  ;;  %v619_v9 = vsub.f32 %v603_v59, %v611_v54  ;;  %v544_v49 = vld [vmem:[%s1371_s20 + $0x20] sm:$0xff] }
  0x74   : > { %v793_v13 = vadd.f32 1e-12, %v785_v2  ;;  %v678_v14 = vadd.f32 %v670_v60, %v661_v47  ;;  %v745_v16 = vadd.f32 %v737_v63, %v1414_v3  ;;  %v754_v17 = vmul.f32 %v989_v33, %v1441_v25  ;;  %v809_v33 = vld [vmem:[%s1364_s29] sm:$0xff]  ;;  %v819_v63 = vld [vmem:[%s1369_s8 + $0x10] sm:$0xff] }
  0x75   : > { %v717_v21 = vadd.f32 %v709_v5, %v633_v1  ;;  %v710_v22 = vadd.f32 1e-12, %v702_v7  ;;  %v786_v58 = vand.u32 2147483647, %v778_v8  ;;  %v627_v23 = vand.u32 2147483647, %v619_v9 }
  0x76   : > { %v695_v26 = vsub.f32 %v678_v14, %v997_v62  ;;  %v762_v27 = vadd.f32 %v754_v17, %v745_v16  ;;  %v570_v28 = vmul.f32 %v1390_v52, %v543_v10  ;;  %v579_v29 = vmul.f32 %v982_v12, %v1409_v0  ;;  %v983_v56 = vld [vmem:[%s1371_s20 + $0x60] sm:$0xff]  ;;  %v998_v62 = vld [vmem:[%s1373_s9 + $0x58] sm:$0xff]  ;;  %v811_v16 = vld [vmem:[%s1364_s29 + $0x10] sm:$0xff] }
  0x77   : > { %v801_v3 = vadd.f32 %v793_v13, %v717_v21  ;;  %v718_v30 = vadd.f32 %v710_v22, %v634_v4  ;;  %v794_v31 = vadd.f32 1e-12, %v786_v58  ;;  %v635_v32 = vadd.f32 1e-12, %v627_v23  ;;  %v991_v2 = vld [vmem:[%s1371_s20 + $0xa0] sm:$0xff]  ;;  %v1006_v17 = vld [vmem:[%s1373_s9 + $0x98] sm:$0xff] }
  0x78   : > { %v703_v35 = vand.u32 2147483647, %v695_v26  ;;  %v779_v36 = vsub.f32 %v762_v27, %v1005_v18  ;;  %v587_v37 = vadd.f32 %v579_v29, %v570_v28  ;;  %v596_v38 = vmul.f32 %v990_v19, %v1431_v15  ;;  %v545_v26 = vld [vmem:[%s1371_s20 + $0x28] sm:$0xff]  ;;  %v613_v28 = vld [vmem:[%s1373_s9 + $0x20] sm:$0xff] }
  0x79   : > { %v825_v39 = vmul.f32 %v817_v24, %v801_v3  ;;  %v802_v40 = vadd.f32 %v794_v31, %v718_v30  ;;  %v645_v42 = vmul.f32 %v1396_v55, %v543_v10  ;;  %v654_v43 = vmul.f32 %v982_v12, %v1418_v6  ;;  %v984_v31 = vld [vmem:[%s1371_s20 + $0x68] sm:$0xff] }
  0x7a   : > { %v711_v45 = vadd.f32 1e-12, %v703_v35  ;;  %v787_v46 = vand.u32 2147483647, %v779_v36  ;;  %v604_v47 = vadd.f32 %v596_v38, %v587_v37  ;;  %v671_v48 = vmul.f32 %v990_v19, %v1436_v20  ;;  %v999_v35 = vld [vmem:[%s1373_s9 + $0x60] sm:$0xff]  ;;  %v992_v37 = vld [vmem:[%s1371_s20 + $0xa8] sm:$0xff] }
  0x7b   : > { %v833_v50 = vadd.f32 %v825_v39, %v809_v33  ;;  %v826_v51 = vmul.f32 %v818_v34, %v802_v40  ;;  %v662_v53 = vadd.f32 %v654_v43, %v645_v42  ;;  %v729_v54 = vmul.f32 %v1405_v61, %v543_v10 }
  0x7c   : > { %v719_v57 = vadd.f32 %v711_v45, %v635_v32  ;;  %v795_v59 = vadd.f32 1e-12, %v787_v46  ;;  %v620_v60 = vsub.f32 %v604_v47, %v612_v41  ;;  %v738_v1 = vmul.f32 %v982_v12, %v1425_v11 }
  0x7d   : > { %841 = vst [vmem:[%s1364_s29] sm:$0xff] %v833_v50  ;;  %v834_v4 = vadd.f32 %v826_v51, %v810_v44  ;;  %v679_v5 = vadd.f32 %v671_v48, %v662_v53  ;;  %v755_v7 = vmul.f32 %v990_v19, %v1441_v25  ;;  %v571_v8 = vmul.f32 %v1390_v52, %v544_v49  ;;  %v1007_v48 = vld [vmem:[%s1373_s9 + $0xa0] sm:$0xff] }
  0x7e   : > { %v803_v9 = vadd.f32 %v795_v59, %v719_v57  ;;  %v628_v10 = vand.u32 2147483647, %v620_v60  ;;  %v746_v13 = vadd.f32 %v738_v1, %v729_v54  ;;  %v580_v14 = vmul.f32 %v983_v56, %v1409_v0  ;;  %v820_v57 = vld [vmem:[%s1369_s8 + $0x18] sm:$0xff]  ;;  %v614_v60 = vld [vmem:[%s1373_s9 + $0x28] sm:$0xff] }
  0x7f   : > { %842 = vst [vmem:[%s1364_s29 + $0x8] sm:$0xff] %v834_v4  ;;  %v696_v12 = vsub.f32 %v679_v5, %v998_v62  ;;  %v597_v18 = vmul.f32 %v991_v2, %v1431_v15  ;;  %v646_v21 = vmul.f32 %v1396_v55, %v544_v49  ;;  %v655_v19 = vmul.f32 %v983_v56, %v1418_v6  ;;  %v546_v4 = vld [vmem:[%s1371_s20 + $0x30] sm:$0xff] }
  0x80   : > { %v827_v22 = vmul.f32 %v819_v63, %v803_v9  ;;  %v636_v58 = vadd.f32 1e-12, %v628_v10  ;;  %v763_v23 = vadd.f32 %v755_v7, %v746_v13  ;;  %v588_v24 = vadd.f32 %v580_v14, %v571_v8  ;;  %v985_v9 = vld [vmem:[%s1371_s20 + $0x70] sm:$0xff]  ;;  %v812_v10 = vld [vmem:[%s1364_s29 + $0x18] sm:$0xff] }
  0x81   : > { %v704_v27 = vand.u32 2147483647, %v696_v12  ;;  %v663_v29 = vadd.f32 %v655_v19, %v646_v21  ;;  %v672_v3 = vmul.f32 %v991_v2, %v1436_v20  ;;  %v730_v30 = vmul.f32 %v1405_v61, %v544_v49 }
  0x82   : > { %v835_v32 = vadd.f32 %v827_v22, %v811_v16  ;;  %v780_v33 = vsub.f32 %v763_v23, %v1006_v17  ;;  %v605_v34 = vadd.f32 %v597_v18, %v588_v24  ;;  %v739_v36 = vmul.f32 %v983_v56, %v1425_v11  ;;  %v993_v17 = vld [vmem:[%s1371_s20 + $0xb0] sm:$0xff]  ;;  %v1000_v22 = vld [vmem:[%s1373_s9 + $0x68] sm:$0xff] }
  0x83   : > { %v712_v38 = vadd.f32 1e-12, %v704_v27  ;;  %v680_v39 = vadd.f32 %v672_v3, %v663_v29  ;;  %v756_v40 = vmul.f32 %v991_v2, %v1441_v25  ;;  %v572_v41 = vmul.f32 %v1390_v52, %v545_v26 }
  0x84   : > { %843 = vst [vmem:[%s1364_s29 + $0x10] sm:$0xff] %v835_v32  ;;  %v788_v42 = vand.u32 2147483647, %v780_v33  ;;  %v621_v43 = vsub.f32 %v605_v34, %v613_v28  ;;  %v747_v44 = vadd.f32 %v739_v36, %v730_v30  ;;  %v581_v45 = vmul.f32 %v984_v31, %v1409_v0  ;;  %v1008_v30 = vld [vmem:[%s1373_s9 + $0xa8] sm:$0xff]  ;;  %v821_v32 = vld [vmem:[%s1369_s8 + $0x20] sm:$0xff] }
  0x85   : > { %v720_v46 = vadd.f32 %v712_v38, %v636_v58  ;;  %v697_v47 = vsub.f32 %v680_v39, %v999_v35  ;;  %v598_v49 = vmul.f32 %v992_v37, %v1431_v15  ;;  %v647_v50 = vmul.f32 %v1396_v55, %v545_v26  ;;  %v615_v39 = vld [vmem:[%s1373_s9 + $0x30] sm:$0xff] }
  0x86   : > { %v796_v51 = vadd.f32 1e-12, %v788_v42  ;;  %v629_v53 = vand.u32 2147483647, %v621_v43  ;;  %v764_v54 = vadd.f32 %v756_v40, %v747_v44  ;;  %v589_v56 = vadd.f32 %v581_v45, %v572_v41  ;;  %v547_v42 = vld [vmem:[%s1371_s20 + $0x38] sm:$0xff]  ;;  %v813_v43 = vld [vmem:[%s1364_s29 + $0x20] sm:$0xff] }
  0x87   : > { %v705_v59 = vand.u32 2147483647, %v697_v47  ;;  %v656_v62 = vmul.f32 %v984_v31, %v1418_v6  ;;  %v673_v1 = vmul.f32 %v992_v37, %v1436_v20  ;;  %v731_v2 = vmul.f32 %v1405_v61, %v545_v26 }
  0x88   : > { %v804_v63 = vadd.f32 %v796_v51, %v720_v46  ;;  %v637_v5 = vadd.f32 1e-12, %v629_v53  ;;  %v781_v7 = vsub.f32 %v764_v54, %v1007_v48  ;;  %v606_v8 = vadd.f32 %v598_v49, %v589_v56  ;;  %v986_v48 = vld [vmem:[%s1371_s20 + $0x78] sm:$0xff] }
  0x89   : > { %v713_v13 = vadd.f32 1e-12, %v705_v59  ;;  %v664_v14 = vadd.f32 %v656_v62, %v647_v50  ;;  %v740_v16 = vmul.f32 %v984_v31, %v1425_v11  ;;  %v757_v12 = vmul.f32 %v992_v37, %v1441_v25  ;;  %v994_v54 = vld [vmem:[%s1371_s20 + $0xb8] sm:$0xff] }
  0x8a   : > { %v828_v18 = vmul.f32 %v820_v57, %v804_v63  ;;  %v789_v21 = vand.u32 2147483647, %v781_v7  ;;  %v622_v19 = vsub.f32 %v606_v8, %v614_v60  ;;  %v573_v58 = vmul.f32 %v1390_v52, %v546_v4  ;;  %v1001_v60 = vld [vmem:[%s1373_s9 + $0x70] sm:$0xff] }
  0x8b   : > { %v721_v23 = vadd.f32 %v713_v13, %v637_v5  ;;  %v681_v24 = vadd.f32 %v673_v1, %v664_v14  ;;  %v748_v26 = vadd.f32 %v740_v16, %v731_v2  ;;  %v582_v27 = vmul.f32 %v985_v9, %v1409_v0  ;;  %v822_v13 = vld [vmem:[%s1369_s8 + $0x28] sm:$0xff] }
  0x8c   : > { %v836_v28 = vadd.f32 %v828_v18, %v812_v10  ;;  %v797_v29 = vadd.f32 1e-12, %v789_v21  ;;  %v630_v3 = vand.u32 2147483647, %v622_v19  ;;  %v599_v31 = vmul.f32 %v993_v17, %v1431_v15  ;;  %v616_v21 = vld [vmem:[%s1373_s9 + $0x38] sm:$0xff] }
  0x8d   : > { %v698_v33 = vsub.f32 %v681_v24, %v1000_v22  ;;  %v765_v34 = vadd.f32 %v757_v12, %v748_v26  ;;  %v590_v35 = vadd.f32 %v582_v27, %v573_v58  ;;  %v648_v36 = vmul.f32 %v1396_v55, %v546_v4  ;;  %v814_v22 = vld [vmem:[%s1364_s29 + $0x28] sm:$0xff] }
  0x8e   : > { %844 = vst [vmem:[%s1364_s29 + $0x18] sm:$0xff] %v836_v28  ;;  %v805_v37 = vadd.f32 %v797_v29, %v721_v23  ;;  %v638_v38 = vadd.f32 1e-12, %v630_v3  ;;  %v657_v40 = vmul.f32 %v985_v9, %v1418_v6  ;;  %v674_v41 = vmul.f32 %v993_v17, %v1436_v20 }
  0x8f   : > { %v706_v44 = vand.u32 2147483647, %v698_v33  ;;  %v782_v45 = vsub.f32 %v765_v34, %v1008_v30  ;;  %v607_v46 = vadd.f32 %v599_v31, %v590_v35  ;;  %v732_v47 = vmul.f32 %v1405_v61, %v546_v4 }
  0x90   : > { %v829_v49 = vmul.f32 %v821_v32, %v805_v37  ;;  %v665_v50 = vadd.f32 %v657_v40, %v648_v36  ;;  %v741_v51 = vmul.f32 %v985_v9, %v1425_v11  ;;  %v758_v53 = vmul.f32 %v993_v17, %v1441_v25  ;;  %v1009_v9 = vld [vmem:[%s1373_s9 + $0xb0] sm:$0xff] }
  0x91   : > { %v714_v56 = vadd.f32 1e-12, %v706_v44  ;;  %v790_v57 = vand.u32 2147483647, %v782_v45  ;;  %v623_v59 = vsub.f32 %v607_v46, %v615_v39  ;;  %v574_v62 = vmul.f32 %v1390_v52, %v547_v42  ;;  %v823_v36 = vld [vmem:[%s1369_s8 + $0x30] sm:$0xff] }
  0x92   : > { %v837_v1 = vadd.f32 %v829_v49, %v813_v43  ;;  %v682_v2 = vadd.f32 %v674_v41, %v665_v50  ;;  %v749_v4 = vadd.f32 %v741_v51, %v732_v47  ;;  %v583_v63 = vmul.f32 %v986_v48, %v1409_v0  ;;  %v816_v50 = vld [vmem:[%s1364_s29 + $0x38] sm:$0xff] }
  0x93   : > { %v722_v5 = vadd.f32 %v714_v56, %v638_v38  ;;  %v798_v7 = vadd.f32 1e-12, %v790_v57  ;;  %v631_v8 = vand.u32 2147483647, %v623_v59  ;;  %v600_v10 = vmul.f32 %v994_v54, %v1431_v15  ;;  %v815_v38 = vld [vmem:[%s1364_s29 + $0x30] sm:$0xff] }
  0x94   : > { %845 = vst [vmem:[%s1364_s29 + $0x20] sm:$0xff] %v837_v1  ;;  %v699_v14 = vsub.f32 %v682_v2, %v1001_v60  ;;  %v766_v16 = vadd.f32 %v758_v53, %v749_v4  ;;  %v591_v12 = vadd.f32 %v583_v63, %v574_v62  ;;  %v649_v52 = vmul.f32 %v1396_v55, %v547_v42 }
  0x95   : > { %v806_v17 = vadd.f32 %v798_v7, %v722_v5  ;;  %v639_v18 = vadd.f32 1e-12, %v631_v8  ;;  %v658_v0 = vmul.f32 %v986_v48, %v1418_v6  ;;  %v675_v19 = vmul.f32 %v994_v54, %v1436_v20  ;;  %v1002_v20 = vld [vmem:[%s1373_s9 + $0x78] sm:$0xff] }
  0x96   : > { %v707_v58 = vand.u32 2147483647, %v699_v14  ;;  %v783_v23 = vsub.f32 %v766_v16, %v1009_v9  ;;  %v608_v24 = vadd.f32 %v600_v10, %v591_v12  ;;  %v733_v15 = vmul.f32 %v1405_v61, %v547_v42  ;;  %v1010_v61 = vld [vmem:[%s1373_s9 + $0xb8] sm:$0xff] }
  0x97   : > { %v830_v26 = vmul.f32 %v822_v13, %v806_v17  ;;  %v666_v27 = vadd.f32 %v658_v0, %v649_v52  ;;  %v742_v55 = vmul.f32 %v986_v48, %v1425_v11  ;;  %v759_v28 = vmul.f32 %v994_v54, %v1441_v25  ;;  %v824_v48 = vld [vmem:[%s1369_s8 + $0x38] sm:$0xff] }
  0x98   : > { %v715_v29 = vadd.f32 1e-12, %v707_v58  ;;  %v791_v6 = vand.u32 2147483647, %v783_v23  ;;  %v624_v3 = vsub.f32 %v608_v24, %v616_v21 }
  0x99   : > { %v838_v30 = vadd.f32 %v830_v26, %v814_v22  ;;  %v683_v31 = vadd.f32 %v675_v19, %v666_v27  ;;  %v750_v32 = vadd.f32 %v742_v55, %v733_v15 }
  0x9a   : > { %v723_v33 = vadd.f32 %v715_v29, %v639_v18  ;;  %v799_v34 = vadd.f32 1e-12, %v791_v6  ;;  %v632_v35 = vand.u32 2147483647, %v624_v3 }
  0x9b   : > { %846 = vst [vmem:[%s1364_s29 + $0x28] sm:$0xff] %v838_v30  ;;  %v700_v37 = vsub.f32 %v683_v31, %v1002_v20  ;;  %v767_v11 = vadd.f32 %v759_v28, %v750_v32 }
  0x9c   : > { %v807_v25 = vadd.f32 %v799_v34, %v723_v33  ;;  %v640_v39 = vadd.f32 1e-12, %v632_v35 }
  0x9d   : > { %v708_v40 = vand.u32 2147483647, %v700_v37  ;;  %v784_v41 = vsub.f32 %v767_v11, %v1010_v61 }
  0x9e   : > { %v831_v42 = vmul.f32 %v823_v36, %v807_v25 }
  0x9f   : > { %v716_v43 = vadd.f32 1e-12, %v708_v40  ;;  %v792_v44 = vand.u32 2147483647, %v784_v41 }
  0xa0   : > { %v839_v45 = vadd.f32 %v831_v42, %v815_v38 }
  0xa1   : > { %v724_v46 = vadd.f32 %v716_v43, %v640_v39  ;;  %v800_v47 = vadd.f32 1e-12, %v792_v44 }
  0xa2   : > { %847 = vst [vmem:[%s1364_s29 + $0x30] sm:$0xff] %v839_v45 }
  0xa3   : > { %v808_v49 = vadd.f32 %v800_v47, %v724_v46 }
  0xa5   : > { %v832_v51 = vmul.f32 %v824_v48, %v808_v49 }
  0xa7   : > { %v840_v53 = vadd.f32 %v832_v51, %v816_v50 }
  0xa9   : > { %848 = vst [vmem:[%s1364_s29 + $0x38] sm:$0xff] %v840_v53 }
  0xaa PF: > { %s20_s25 = sadd.s32 1, %s1145_s25   ;;  %s1588_s20 = smov %s1125_s21 }
  0xab   : > { %p17_p4 = scmp.ge.s32.totalorder %s20_s25, 6   ;;  %s1589_s21 = smov %s1232_s7 }
  0xac   : > { %s1590_s22 = smov %s1137_s23  ;;  %s1591_s0 = smov %s1141_s24 }
  0xad   : > { %s1592_s23 = smov %s1595_s26  ;;  %s1593_s24 = smov %s1599_s27 }
  0xae   :  { %19 = sbr.rel (!%p17_p4) target bundleno = 19 (0x13), region = 162 }

</bundles_post_ra>
